<compile_context>
chip_gen: v7x
topology: tpu7x:2x2x1
jax: 0.10.0
libtpu: 0.0.40
codegen_flags: <defaults>
</compile_context>

<pallas_src>
import jax
import jax.numpy as jnp
from jax.experimental import pallas as pl
from jax.experimental.pallas import tpu as pltpu

IN_DIM = 28 * 28          # 784
H1 = 512
H2 = 256
OUT_DIM = 10              # logical output width
OUT_PAD = 128             # lane-dense padded output width

_NEG_BIG = -1e30          # finite "-inf" for masked pad columns


def _round_up(x, m):
    return ((x + m - 1) // m) * m


def _sigmoid_one_push(h_f32):
    # sigmoid(x) = 0.5*tanh(0.5*x) + 0.5 : a single EUP push (vs exp + reciprocal).
    # tanh computed in bf16 (packed EUP path on v6e/v7x); result feeds a bf16 matmul.
    t = jnp.tanh((0.5 * h_f32).astype(jnp.bfloat16))
    return (0.5 * t + 0.5).astype(jnp.bfloat16)


def _mlp_kernel(x_ref, w1_ref, b1_ref, w2_ref, b2_ref, w3_ref, b3_ref, o_ref):
    # x tile: (TB, 784) f32 straight from HBM; cast to bf16 in-kernel.
    x = x_ref[...].astype(jnp.bfloat16)

    # hidden1 + Sigmoid (MXU accumulates f32)
    h1 = jnp.dot(x, w1_ref[...], preferred_element_type=jnp.float32) + b1_ref[...]
    a1 = _sigmoid_one_push(h1)

    # hidden2 + Sigmoid
    h2 = jnp.dot(a1, w2_ref[...], preferred_element_type=jnp.float32) + b2_ref[...]
    a2 = _sigmoid_one_push(h2)

    # output linear (lane-dense padded to OUT_PAD columns)
    logits = jnp.dot(a2, w3_ref[...], preferred_element_type=jnp.float32) + b3_ref[...]

    # mask padded columns so they don't contaminate the log_softmax reduction
    col = jax.lax.broadcasted_iota(jnp.int32, logits.shape, 1)
    logits = jnp.where(col < OUT_DIM, logits, _NEG_BIG)

    # stable log_softmax over dim=1 (f32)
    m = jnp.max(logits, axis=1, keepdims=True)
    shifted = logits - m
    lse = jnp.log(jnp.sum(jnp.exp(shifted), axis=1, keepdims=True))
    o_ref[...] = (shifted - lse).astype(o_ref.dtype)


def mlp_forward(x, w1, b1, w2, b2, w3, b3, *, tb=1024):
    """x: (B, 784) float32. Weights bf16 in (in, out) layout, biases f32 (see init_params)."""
    B = x.shape[0]
    assert x.shape[1] == IN_DIM

    # Batch tile: multiple of 8 sublanes, up to `tb`. If the batch is large enough,
    # keep >= 2 grid steps so both TensorCores on v7x receive work.
    Bp8 = _round_up(B, 8)
    TB = min(tb, Bp8)
    if Bp8 >= 16 and Bp8 // TB < 2:
        TB = _round_up(pl.cdiv(Bp8, 2), 8)
    Bp = _round_up(B, TB)

    xp = x if Bp == B else jnp.pad(x, ((0, Bp - B), (0, 0)))

    resident = lambda shape: pl.BlockSpec(shape, lambda i: (0,) * len(shape))

    out = pl.pallas_call(
        _mlp_kernel,
        out_shape=jax.ShapeDtypeStruct((Bp, OUT_PAD), jnp.float32),
        grid=(Bp // TB,),
        in_specs=[
            pl.BlockSpec((TB, IN_DIM), lambda i: (i, 0)),   # X tile walks batch
            resident((IN_DIM, H1)), resident((1, H1)),      # weights/biases stay resident
            resident((H1, H2)), resident((1, H2)),
            resident((H2, OUT_PAD)), resident((1, OUT_PAD)),
        ],
        out_specs=pl.BlockSpec((TB, OUT_PAD), lambda i: (i, 0)),
        compiler_params=pltpu.CompilerParams(
            dimension_semantics=("parallel",),
            vmem_limit_bytes=48 * 1024 * 1024,   # headroom for TB=1024 on v5e
        ),
    )(xp, w1, b1, w2, b2, w3, b3)

    # TODO(synk): in a real pipeline, fuse this slice into the consumer instead of
    # materializing a second copy of the padded output.
    return out[:B, :OUT_DIM]


def init_params(key):
    # PyTorch Linear default init: U(-1/sqrt(fan_in), 1/sqrt(fan_in)) with logical fan_in.
    # Weights stored (in, out) so the kernel computes y = x @ W + b; output layer padded
    # lane-dense to OUT_PAD columns. Weights bf16, biases f32.
    ks = jax.random.split(key, 6)

    def lin(kw, kb, fan_in, fan_out, pad_out):
        bound = 1.0 / jnp.sqrt(jnp.float32(fan_in))
        w = jax.random.uniform(kw, (fan_in, fan_out), jnp.float32, -bound, bound)
        b = jax.random.uniform(kb, (1, fan_out), jnp.float32, -bound, bound)
        w = jnp.pad(w, ((0, 0), (0, pad_out - fan_out)))
        b = jnp.pad(b, ((0, 0), (0, pad_out - fan_out)))
        return w.astype(jnp.bfloat16), b.astype(jnp.float32)

    w1, b1 = lin(ks[0], ks[1], IN_DIM, H1, H1)
    w2, b2 = lin(ks[2], ks[3], H1, H2, H2)
    w3, b3 = lin(ks[4], ks[5], H2, OUT_DIM, OUT_PAD)
    return w1, b1, w2, b2, w3, b3


def _ref_forward(x, w1, b1, w2, b2, w3, b3):
    # Pure-JAX f32 reference using the same (bf16-stored) weights upcast to f32.
    w1f, w2f, w3f = (w.astype(jnp.float32) for w in (w1, w2, w3))
    h1 = jax.nn.sigmoid(x @ w1f + b1)
    h2 = jax.nn.sigmoid(h1 @ w2f + b2)
    logits = (h2 @ w3f + b3)[:, :OUT_DIM]
    return jax.nn.log_softmax(logits, axis=1)


if __name__ == "__main__":
    key = jax.random.PRNGKey(0)
    k_params, k_x = jax.random.split(key)
    params = init_params(k_params)

    # B=8 -> single-step grid; B=40 -> padded, 2-step grid (exercises pipelining path).
    for B in (8, 40):
        x = jax.random.normal(jax.random.fold_in(k_x, B), (B, IN_DIM), jnp.float32)
        out = mlp_forward(x, *params)
        jax.block_until_ready(out)

        assert out.shape == (B, OUT_DIM)
        row_sums = jnp.sum(jnp.exp(out), axis=1)
        assert bool(jnp.all(jnp.abs(row_sums - 1.0) < 1e-3))
        assert bool(jnp.all(jnp.isfinite(out)))

        ref = _ref_forward(x, *params)
        assert bool(jnp.max(jnp.abs(out - ref)) < 0.1)  # bf16 activations vs f32 reference

    print("KERNEL_OK")
</pallas_src>

<mosaic_0001>
module attributes {stable_mosaic.version = 11 : i64} {
  func.func @_mlp_kernel(%arg0: i32, %arg1: memref<8x784xf32, #tpu.memory_space<vmem>>, %arg2: memref<784x512xbf16, #tpu.memory_space<vmem>>, %arg3: memref<1x512xf32, #tpu.memory_space<vmem>>, %arg4: memref<512x256xbf16, #tpu.memory_space<vmem>>, %arg5: memref<1x256xf32, #tpu.memory_space<vmem>>, %arg6: memref<256x128xbf16, #tpu.memory_space<vmem>>, %arg7: memref<1x128xf32, #tpu.memory_space<vmem>>, %arg8: memref<8x128xf32, #tpu.memory_space<vmem>>) attributes {dimension_semantics = [#tpu.dimension_semantics<parallel>], iteration_bounds = array<i64: 1>, scalar_prefetch = 0 : i64, scratch_operands = 0 : i64, tpu.core_type = #tpu.core_type<tc>, window_params = [{transform_indices = @transform_0, window_bounds = array<i64: 8, 784>}, {pipeline_mode = #tpu.pipeline_mode<synchronous>, transform_indices = @transform_1, window_bounds = array<i64: 784, 512>}, {pipeline_mode = #tpu.pipeline_mode<synchronous>, transform_indices = @transform_2, window_bounds = array<i64: 1, 512>}, {pipeline_mode = #tpu.pipeline_mode<synchronous>, transform_indices = @transform_3, window_bounds = array<i64: 512, 256>}, {pipeline_mode = #tpu.pipeline_mode<synchronous>, transform_indices = @transform_4, window_bounds = array<i64: 1, 256>}, {pipeline_mode = #tpu.pipeline_mode<synchronous>, transform_indices = @transform_5, window_bounds = array<i64: 256, 128>}, {pipeline_mode = #tpu.pipeline_mode<synchronous>, transform_indices = @transform_6, window_bounds = array<i64: 1, 128>}, {transform_indices = @transform_7, window_bounds = array<i64: 8, 128>}]} {
    %c0 = arith.constant 0 : index
    %c0_0 = arith.constant 0 : index
    %0 = vector.load %arg1[%c0, %c0_0] : memref<8x784xf32, #tpu.memory_space<vmem>>, vector<8x784xf32>
    %1 = arith.truncf %0 : vector<8x784xf32> to vector<8x784xbf16>
    %c0_1 = arith.constant 0 : index
    %c0_2 = arith.constant 0 : index
    %2 = vector.load %arg2[%c0_1, %c0_2] : memref<784x512xbf16, #tpu.memory_space<vmem>>, vector<784x512xbf16>
    %cst = arith.constant dense<0.000000e+00> : vector<8x512xf32>
    %3 = tpu.matmul %1, %2, %cst {dimension_numbers = #tpu.dot_dimension_numbers<[1], [0], [0], [1], [0, 0, 1, 1], [], []>} : vector<8x784xbf16>, vector<784x512xbf16>, vector<8x512xf32> -> vector<8x512xf32>
    %c0_3 = arith.constant 0 : index
    %c0_4 = arith.constant 0 : index
    %4 = vector.load %arg3[%c0_3, %c0_4] : memref<1x512xf32, #tpu.memory_space<vmem>>, vector<1x512xf32>
    %5 = vector.broadcast %4 : vector<1x512xf32> to vector<8x512xf32>
    %6 = arith.addf %3, %5 : vector<8x512xf32>
    %cst_5 = arith.constant 5.000000e-01 : f32
    %7 = vector.broadcast %cst_5 : f32 to vector<8x512xf32>
    %8 = arith.mulf %7, %6 : vector<8x512xf32>
    %9 = arith.truncf %8 : vector<8x512xf32> to vector<8x512xbf16>
    %10 = math.tanh %9 : vector<8x512xbf16>
    %cst_6 = arith.constant 5.000000e-01 : bf16
    %11 = vector.broadcast %cst_6 : bf16 to vector<8x512xbf16>
    %12 = arith.mulf %11, %10 : vector<8x512xbf16>
    %cst_7 = arith.constant 5.000000e-01 : bf16
    %13 = vector.broadcast %cst_7 : bf16 to vector<8x512xbf16>
    %14 = arith.addf %12, %13 : vector<8x512xbf16>
    %c0_8 = arith.constant 0 : index
    %c0_9 = arith.constant 0 : index
    %15 = vector.load %arg4[%c0_8, %c0_9] : memref<512x256xbf16, #tpu.memory_space<vmem>>, vector<512x256xbf16>
    %cst_10 = arith.constant dense<0.000000e+00> : vector<8x256xf32>
    %16 = tpu.matmul %14, %15, %cst_10 {dimension_numbers = #tpu.dot_dimension_numbers<[1], [0], [0], [1], [0, 0, 1, 1], [], []>} : vector<8x512xbf16>, vector<512x256xbf16>, vector<8x256xf32> -> vector<8x256xf32>
    %c0_11 = arith.constant 0 : index
    %c0_12 = arith.constant 0 : index
    %17 = vector.load %arg5[%c0_11, %c0_12] : memref<1x256xf32, #tpu.memory_space<vmem>>, vector<1x256xf32>
    %18 = vector.broadcast %17 : vector<1x256xf32> to vector<8x256xf32>
    %19 = arith.addf %16, %18 : vector<8x256xf32>
    %cst_13 = arith.constant 5.000000e-01 : f32
    %20 = vector.broadcast %cst_13 : f32 to vector<8x256xf32>
    %21 = arith.mulf %20, %19 : vector<8x256xf32>
    %22 = arith.truncf %21 : vector<8x256xf32> to vector<8x256xbf16>
    %23 = math.tanh %22 : vector<8x256xbf16>
    %cst_14 = arith.constant 5.000000e-01 : bf16
    %24 = vector.broadcast %cst_14 : bf16 to vector<8x256xbf16>
    %25 = arith.mulf %24, %23 : vector<8x256xbf16>
    %cst_15 = arith.constant 5.000000e-01 : bf16
    %26 = vector.broadcast %cst_15 : bf16 to vector<8x256xbf16>
    %27 = arith.addf %25, %26 : vector<8x256xbf16>
    %c0_16 = arith.constant 0 : index
    %c0_17 = arith.constant 0 : index
    %28 = vector.load %arg6[%c0_16, %c0_17] : memref<256x128xbf16, #tpu.memory_space<vmem>>, vector<256x128xbf16>
    %cst_18 = arith.constant dense<0.000000e+00> : vector<8x128xf32>
    %29 = tpu.matmul %27, %28, %cst_18 {dimension_numbers = #tpu.dot_dimension_numbers<[1], [0], [0], [1], [0, 0, 1, 1], [], []>} : vector<8x256xbf16>, vector<256x128xbf16>, vector<8x128xf32> -> vector<8x128xf32>
    %c0_19 = arith.constant 0 : index
    %c0_20 = arith.constant 0 : index
    %30 = vector.load %arg7[%c0_19, %c0_20] : memref<1x128xf32, #tpu.memory_space<vmem>>, vector<1x128xf32>
    %31 = vector.broadcast %30 : vector<1x128xf32> to vector<8x128xf32>
    %32 = arith.addf %29, %31 : vector<8x128xf32>
    %33 = tpu.iota {dimensions = array<i32: 1>} : vector<8x128xi32>
    %c10_i32 = arith.constant 10 : i32
    %34 = vector.broadcast %c10_i32 : i32 to vector<8x128xi32>
    %35 = arith.cmpi slt, %33, %34 : vector<8x128xi32>
    %cst_21 = arith.constant -1.000000e+30 : f32
    %36 = vector.broadcast %cst_21 : f32 to vector<8x128xf32>
    %37 = arith.select %35, %32, %36 : vector<8x128xi1>, vector<8x128xf32>
    %cst_22 = arith.constant dense<0xFF800000> : vector<8xf32>
    %38 = vector.multi_reduction <maximumf>, %37, %cst_22 [1] : vector<8x128xf32> to vector<8xf32>
    %39 = vector.shape_cast %38 : vector<8xf32> to vector<8x1xf32>
    %40 = vector.broadcast %39 : vector<8x1xf32> to vector<8x128xf32>
    %41 = arith.subf %37, %40 : vector<8x128xf32>
    %42 = math.exp %41 : vector<8x128xf32>
    %cst_23 = arith.constant dense<0.000000e+00> : vector<8xf32>
    %43 = vector.multi_reduction <add>, %42, %cst_23 [1] : vector<8x128xf32> to vector<8xf32>
    %44 = vector.shape_cast %43 : vector<8xf32> to vector<8x1xf32>
    %45 = math.log %44 : vector<8x1xf32>
    %46 = vector.broadcast %45 : vector<8x1xf32> to vector<8x128xf32>
    %47 = arith.subf %41, %46 : vector<8x128xf32>
    %c0_24 = arith.constant 0 : index
    %c0_25 = arith.constant 0 : index
    %48 = vector.load %arg8[%c0_24, %c0_25] : memref<8x128xf32, #tpu.memory_space<vmem>>, vector<8x128xf32>
    tpu.vector_store %arg8[%c0_24, %c0_25], %47 {strides = array<i32>} : memref<8x128xf32, #tpu.memory_space<vmem>>, vector<8x128xf32>,
    return
  }
  func.func @transform_0(%arg0: i32) -> (i32, i32) {
    %c0_i32 = arith.constant 0 : i32
    %c0_i32_0 = arith.constant 0 : i32
    return %arg0, %c0_i32 : i32, i32
  }
  func.func @transform_1(%arg0: i32) -> (i32, i32) {
    %c0_i32 = arith.constant 0 : i32
    %c0_i32_0 = arith.constant 0 : i32
    %c0_i32_1 = arith.constant 0 : i32
    return %c0_i32, %c0_i32_0 : i32, i32
  }
  func.func @transform_2(%arg0: i32) -> (i32, i32) {
    %c0_i32 = arith.constant 0 : i32
    %c0_i32_0 = arith.constant 0 : i32
    %c0_i32_1 = arith.constant 0 : i32
    return %c0_i32, %c0_i32_0 : i32, i32
  }
  func.func @transform_3(%arg0: i32) -> (i32, i32) {
    %c0_i32 = arith.constant 0 : i32
    %c0_i32_0 = arith.constant 0 : i32
    %c0_i32_1 = arith.constant 0 : i32
    return %c0_i32, %c0_i32_0 : i32, i32
  }
  func.func @transform_4(%arg0: i32) -> (i32, i32) {
    %c0_i32 = arith.constant 0 : i32
    %c0_i32_0 = arith.constant 0 : i32
    %c0_i32_1 = arith.constant 0 : i32
    return %c0_i32, %c0_i32_0 : i32, i32
  }
  func.func @transform_5(%arg0: i32) -> (i32, i32) {
    %c0_i32 = arith.constant 0 : i32
    %c0_i32_0 = arith.constant 0 : i32
    %c0_i32_1 = arith.constant 0 : i32
    return %c0_i32, %c0_i32_0 : i32, i32
  }
  func.func @transform_6(%arg0: i32) -> (i32, i32) {
    %c0_i32 = arith.constant 0 : i32
    %c0_i32_0 = arith.constant 0 : i32
    %c0_i32_1 = arith.constant 0 : i32
    return %c0_i32, %c0_i32_0 : i32, i32
  }
  func.func @transform_7(%arg0: i32) -> (i32, i32) {
    %c0_i32 = arith.constant 0 : i32
    %c0_i32_0 = arith.constant 0 : i32
    return %arg0, %c0_i32 : i32, i32
  }
}

</mosaic_0001>

<bundles_post_ra>
// kernel: tpu_custom_call.1
= control target key start
LH: loop header
LB: loop body
LE: loop exit
PB: predicated region body
PF: predicated region fallthrough
CT: control target
= control target key end

     0   :  { %12 = vsyncpa [#allocation3], 0  ;;  %s3397_s0 = inlined_call_operand.hbm [shape: f32[8,784], index: 0, kind: input, shape index: {}]   ;;  %s3398_s1 = inlined_call_operand.hbm [shape: bf16[784,512], index: 1, kind: input, shape index: {}]   ;;  %s3399_s2 = inlined_call_operand.vmem [shape: f32[1,512], index: 2, kind: input, shape index: {}]   ;;  %s3400_s3 = inlined_call_operand.hbm [shape: bf16[512,256], index: 3, kind: input, shape index: {}]   ;;  %s3401_s4 = inlined_call_operand.vmem [shape: f32[1,256], index: 4, kind: input, shape index: {}]   ;;  %s3402_s5 = inlined_call_operand.hbm [shape: bf16[256,128], index: 5, kind: input, shape index: {}]   ;;  %s3403_s6 = inlined_call_operand.vmem [shape: f32[1,128], index: 6, kind: input, shape index: {}]   ;;  %s3404_s7 = inlined_call_operand.hbm [shape: f32[8,128], index: 7, kind: output, shape index: {}]  }
   0x1   :  { %13 = vsyncpa [#allocation6], 0 }
   0x2   :  { %14 = vsyncpa [#allocation9], 0 }
   0x3   :  { %15 = vsyncpa [#allocation4], 0  ;;  %s3224_s24 = smov [#allocation5]   ;;  %s3106_s28 = scalar_lea.hbm %s3398_s1, 25088 }
   0x4   :  { %s31_s25 = sshll.u32 %s3224_s24, 4  ;;  %p3107_p0 = scmp.ne.s32.totalorder %s3398_s1, %s3106_s28  ;;  %s32_s25 = int_to_ptr.vmem [resolvable:$true] %s31_s25 }
   0x5   :  { %p3110_p1 = scmp.lt.u32.totalorder %s3106_s28, %s3398_s1 }
   0x7   :  { %p3112_p2 = pnand %p3110_p1, %p3107_p0 }
   0x9   :  { %3115 = shalt.err (!%p3112_p2)
}
   0xa   :  { %s3116_s10 = scalar_lea.vmem %s32_s25, 25088  ;;  %p3121_p4 = scmp.lt.s32.totalorder %s32_s25, %s32_s25 }
   0xb   :  { %p3117_p3 = scmp.ne.s32.totalorder %s32_s25, %s3116_s10  ;;  %p3122_p5 = scmp.lt.s32.totalorder %s3116_s10, %s3116_s10 }
   0xd   :  { %p3123_p6 = por %p3122_p5, %p3121_p4 }
   0xf   :  { %p3124_p7 = pnand %p3123_p6, %p3117_p3 }
  0x11   :  { %3127 = shalt.err (!%p3124_p7)
}
  0x12   :  { %s3225_s11 = smov 256   ;;  %s3226_s12 = smov 16  }
  0x13   :  { %37 = dma.hbm_to_vmem [thread:$0]  %s3398_s1, 25088, %s32_s25, [#allocation6], %s3225_s11, %s3225_s11, %s3226_s12  }
  0x14   :  { %s3227_s15 = smov [#allocation2]   ;;  %s3228_s17 = smov [#allocation7]  }
  0x15   :  { %s22_s16 = sshll.u32 %s3227_s15, 4  ;;  %s45_s18 = sshll.u32 %s3228_s17, 4  ;;  %s23_s16 = int_to_ptr.vmem [resolvable:$true] %s22_s16  ;;  %s46_s18 = int_to_ptr.vmem [resolvable:$true] %s45_s18 }
  0x16   :  { %s3128_s21 = scalar_lea.hbm %s3397_s0, 896 }
  0x17   :  { %p3129_p8 = scmp.ne.s32.totalorder %s3397_s0, %s3128_s21  ;;  %p3132_p9 = scmp.lt.u32.totalorder %s3128_s21, %s3397_s0 }
  0x19   :  { %p3134_p10 = pnand %p3132_p9, %p3129_p8 }
  0x1b   :  { %3137 = shalt.err (!%p3134_p10)
}
  0x1c   :  { %s3138_s1 = scalar_lea.vmem %s23_s16, 896  ;;  %p3143_p12 = scmp.lt.s32.totalorder %s23_s16, %s23_s16 }
  0x1d   :  { %p3139_p11 = scmp.ne.s32.totalorder %s23_s16, %s3138_s1  ;;  %p3144_p13 = scmp.lt.s32.totalorder %s3138_s1, %s3138_s1 }
  0x1f   :  { %p3145_p0 = por %p3144_p13, %p3143_p12 }
  0x21   :  { %p3146_p1 = pnand %p3145_p0, %p3139_p11 }
  0x23   :  { %3149 = shalt.err (!%p3146_p1)
}
  0x24   :  { %25 = dma.hbm_to_vmem [thread:$0]  %s3397_s0, 896, %s23_s16, [#allocation3]  }
  0x25   :  { %s3150_s30 = scalar_lea.hbm %s3400_s3, 8192 }
  0x26   :  { %p3151_p2 = scmp.ne.s32.totalorder %s3400_s3, %s3150_s30  ;;  %p3154_p3 = scmp.lt.u32.totalorder %s3150_s30, %s3400_s3 }
  0x28   :  { %p3156_p4 = pnand %p3154_p3, %p3151_p2 }
  0x2a   :  { %3159 = shalt.err (!%p3156_p4)
}
  0x2b   :  { %s3160_s12 = scalar_lea.vmem %s46_s18, 8192  ;;  %p3165_p6 = scmp.lt.s32.totalorder %s46_s18, %s46_s18 }
  0x2c   :  { %p3161_p5 = scmp.ne.s32.totalorder %s46_s18, %s3160_s12  ;;  %p3166_p7 = scmp.lt.s32.totalorder %s3160_s12, %s3160_s12 }
  0x2e   :  { %p3167_p8 = por %p3166_p7, %p3165_p6 }
  0x30   :  { %p3168_p9 = pnand %p3167_p8, %p3161_p5 }
  0x32   :  { %3171 = shalt.err (!%p3168_p9)
}
  0x33   :  { %s3229_s0 = smov 128   ;;  %s3230_s13 = smov 8  }
  0x34   :  { %51 = dma.hbm_to_vmem [thread:$0]  %s3400_s3, 8192, %s46_s18, [#allocation6], %s3229_s0, %s3229_s0, %s3230_s13  }
  0x35   :  { %s3231_s16 = smov [#allocation8]   ;;  %s3172_s21 = scalar_lea.hbm %s3402_s5, 2048 }
  0x36   :  { %s59_s17 = sshll.u32 %s3231_s16, 4  ;;  %p3173_p10 = scmp.ne.s32.totalorder %s3402_s5, %s3172_s21  ;;  %s60_s17 = int_to_ptr.vmem [resolvable:$true] %s59_s17 }
  0x37   :  { %p3176_p11 = scmp.lt.u32.totalorder %s3172_s21, %s3402_s5 }
  0x39   :  { %p3178_p12 = pnand %p3176_p11, %p3173_p10 }
  0x3b   :  { %3181 = shalt.err (!%p3178_p12)
}
  0x3c   :  { %s3182_s1 = scalar_lea.vmem %s60_s17, 2048  ;;  %p3187_p0 = scmp.lt.s32.totalorder %s60_s17, %s60_s17 }
  0x3d   :  { %p3183_p13 = scmp.ne.s32.totalorder %s60_s17, %s3182_s1  ;;  %p3188_p1 = scmp.lt.s32.totalorder %s3182_s1, %s3182_s1 }
  0x3f   :  { %p3189_p2 = por %p3188_p1, %p3187_p0 }
  0x41   :  { %p3190_p3 = pnand %p3189_p2, %p3183_p13 }
  0x43   :  { %3193 = shalt.err (!%p3190_p3)
}
  0x44   :  { %s3232_s3 = smov 64   ;;  %s3233_s18 = smov 4  }
  0x45   :  { %65 = dma.hbm_to_vmem [thread:$0]  %s3402_s5, 2048, %s60_s17, [#allocation9], %s3232_s3, %s3232_s3, %s3233_s18  }
  0x46   :  { %3216 = dma.done.wait [#allocation3], 896  }
  0x47   :  { %3217 = vsyncadd [#allocation3], 4294966400 }
  0x48   :  { %3218 = dma.done.wait [#allocation6], 33280  }
  0x49   :  { %3219 = vsyncadd [#allocation6], 4294934016 }
  0x4a   :  { %3220 = dma.done.wait [#allocation9], 2048  }
  0x4b   :  { %3221 = vsyncadd [#allocation9], 4294965248  ;;  %v2684_v0 = vld [vmem:[#allocation5 + $0x4] ss:$16 sps:$4 sm:$0xff]   ;;  %v2688_v2 = vld [vmem:[#allocation5] ss:$16 sps:$4 sm:$0xff]  }
  0x4c   :  { %v2686_v1 = vld [vmem:[#allocation5 + $0x204] ss:$16 sps:$4 sm:$0xff]   ;;  %1298 = vmatprep.subr.bf16.mxu1 %v2684_v0  ;;  %v2689_v3 = vld [vmem:[#allocation5 + $0x200] ss:$16 sps:$4 sm:$0xff]   ;;  %vm1294_vm0 = vcmask 130048   ;;  %s3235_s8 = smov [#allocation10]  }
  0x4d   :  { %1339 = vmatprep.subr.bf16.mxu0 %v2686_v1  ;;  %v2690_v4 = vld [vmem:[#allocation5 + $0x24] ss:$16 sps:$4 sm:$0xff]   ;;  %1299 = vmatpush1.bf16.msra.mxu1 %v2688_v2  ;;  %v2694_v6 = vld [vmem:[#allocation5 + $0x20] ss:$16 sps:$4 sm:$0xff]   ;;  %s2330_s9 = sshll.u32 %s3235_s8, 4  ;;  %s2331_s9 = int_to_ptr.vmem [resolvable:$true] %s2330_s9 }
  0x4e   :  { %1340 = vmatpush1.bf16.msra.mxu0 %v2689_v3  ;;  %v2692_v5 = vld [vmem:[#allocation5 + $0x224] ss:$16 sps:$4 sm:$0xff]   ;;  %1300 = vmatprep.subr.bf16.mxu1 %v2690_v4  ;;  %v2695_v7 = vld [vmem:[#allocation5 + $0x220] ss:$16 sps:$4 sm:$0xff]   ;;  %v82_v4 = vld [vmem:[#allocation2] sm:$0xff]  ;;  %p3199_p5 = scmp.lt.s32.totalorder %s2331_s9, %s2331_s9 }
  0x4f   :  { %1341 = vmatprep.subr.bf16.mxu0 %v2692_v5  ;;  %v2696_v8 = vld [vmem:[#allocation5 + $0x44] ss:$16 sps:$4 sm:$0xff]   ;;  %v2700_v10 = vld [vmem:[#allocation5 + $0x40] ss:$16 sps:$4 sm:$0xff]  }
  0x50   :  { %v2698_v9 = vld [vmem:[#allocation5 + $0x244] ss:$16 sps:$4 sm:$0xff]   ;;  %v2701_v11 = vld [vmem:[#allocation5 + $0x240] ss:$16 sps:$4 sm:$0xff]  }
  0x51   :  { %1301 = vmatpush1.bf16.msra.mxu1 %v2694_v6  ;;  %v2702_v12 = vld [vmem:[#allocation5 + $0x64] ss:$16 sps:$4 sm:$0xff]   ;;  %v2706_v14 = vld [vmem:[#allocation5 + $0x60] ss:$16 sps:$4 sm:$0xff]   ;;  %v84_v6 = vld [vmem:[#allocation2 + $0x10] sm:$0xff] }
  0x52   :  { %1342 = vmatpush1.bf16.msra.mxu0 %v2695_v7  ;;  %1302 = vmatprep.subr.bf16.mxu1 %v2696_v8  ;;  %v2704_v13 = vld [vmem:[#allocation5 + $0x264] ss:$16 sps:$4 sm:$0xff]   ;;  %v2707_v15 = vld [vmem:[#allocation5 + $0x260] ss:$16 sps:$4 sm:$0xff]   ;;  %v2785_v7 = vld [vmem:[#allocation5 + $0xc] ss:$16 sps:$4 sm:$0xff]   ;;  %v3330_v8 = vpack.c.bf16 %v82_v4, %v82_v4 }
  0x53   :  { %1343 = vmatprep.subr.bf16.mxu0 %v2698_v9  ;;  %v2708_v16 = vld [vmem:[#allocation5 + $0x84] ss:$16 sps:$4 sm:$0xff]   ;;  %v2712_v18 = vld [vmem:[#allocation5 + $0x80] ss:$16 sps:$4 sm:$0xff]   ;;  %v2869_v4 = vld [vmem:[#allocation5 + $0x1cc] ss:$16 sps:$4 sm:$0xff]  }
  0x54   :  { %v2710_v17 = vld [vmem:[#allocation5 + $0x284] ss:$16 sps:$4 sm:$0xff]   ;;  %v2713_v19 = vld [vmem:[#allocation5 + $0x280] ss:$16 sps:$4 sm:$0xff]  }
  0x55   :  { %1303 = vmatpush1.bf16.msra.mxu1 %v2700_v10  ;;  %v2714_v20 = vld [vmem:[#allocation5 + $0xa4] ss:$16 sps:$4 sm:$0xff]   ;;  %v2718_v22 = vld [vmem:[#allocation5 + $0xa0] ss:$16 sps:$4 sm:$0xff]   ;;  %v2783_v10 = vld [vmem:[#allocation5 + $0x8] ss:$16 sps:$4 sm:$0xff]  }
  0x56   :  { %1344 = vmatpush1.bf16.msra.mxu0 %v2701_v11  ;;  %1304 = vmatprep.subr.bf16.mxu1 %v2702_v12  ;;  %v2716_v21 = vld [vmem:[#allocation5 + $0x2a4] ss:$16 sps:$4 sm:$0xff]   ;;  %v2719_v23 = vld [vmem:[#allocation5 + $0x2a0] ss:$16 sps:$4 sm:$0xff]   ;;  %v3332_v11 = vpack.c.bf16 %v84_v6, %v84_v6  ;;  %v2867_v6 = vld [vmem:[#allocation5 + $0x1c8] ss:$16 sps:$4 sm:$0xff]  }
  0x57   :  { %1345 = vmatprep.subr.bf16.mxu0 %v2704_v13  ;;  %v2720_v24 = vld [vmem:[#allocation5 + $0xc4] ss:$16 sps:$4 sm:$0xff]   ;;  %v2724_v26 = vld [vmem:[#allocation5 + $0xc0] ss:$16 sps:$4 sm:$0xff]   ;;  %v2791_v13 = vld [vmem:[#allocation5 + $0x2c] ss:$16 sps:$4 sm:$0xff]  }
  0x58   :  { %v2722_v25 = vld [vmem:[#allocation5 + $0x2c4] ss:$16 sps:$4 sm:$0xff]   ;;  %v2725_v27 = vld [vmem:[#allocation5 + $0x2c0] ss:$16 sps:$4 sm:$0xff]  }
  0x59   :  { %1305 = vmatpush1.bf16.msra.mxu1 %v2706_v14  ;;  %v2726_v28 = vld [vmem:[#allocation5 + $0xe4] ss:$16 sps:$4 sm:$0xff]   ;;  %v2730_v30 = vld [vmem:[#allocation5 + $0xe0] ss:$16 sps:$4 sm:$0xff]  }
  0x5a   :  { %1346 = vmatpush1.bf16.msra.mxu0 %v2707_v15  ;;  %1306 = vmatprep.subr.bf16.mxu1 %v2708_v16  ;;  %v2728_v29 = vld [vmem:[#allocation5 + $0x2e4] ss:$16 sps:$4 sm:$0xff]   ;;  %v2731_v31 = vld [vmem:[#allocation5 + $0x2e0] ss:$16 sps:$4 sm:$0xff]   ;;  %v2789_v15 = vld [vmem:[#allocation5 + $0x28] ss:$16 sps:$4 sm:$0xff]  }
  0x5b   :  { %1347 = vmatprep.subr.bf16.mxu0 %v2710_v17  ;;  %v2732_v32 = vld [vmem:[#allocation5 + $0x104] ss:$16 sps:$4 sm:$0xff]   ;;  %v2736_v34 = vld [vmem:[#allocation5 + $0x100] ss:$16 sps:$4 sm:$0xff]   ;;  %v2797_v17 = vld [vmem:[#allocation5 + $0x4c] ss:$16 sps:$4 sm:$0xff]  }
  0x5c   :  { %v2734_v33 = vld [vmem:[#allocation5 + $0x304] ss:$16 sps:$4 sm:$0xff]   ;;  %v2737_v35 = vld [vmem:[#allocation5 + $0x300] ss:$16 sps:$4 sm:$0xff]  }
  0x5d   :  { %1307 = vmatpush1.bf16.msra.mxu1 %v2712_v18  ;;  %v2738_v36 = vld [vmem:[#allocation5 + $0x124] ss:$16 sps:$4 sm:$0xff]   ;;  %v2742_v38 = vld [vmem:[#allocation5 + $0x120] ss:$16 sps:$4 sm:$0xff]  }
  0x5e   :  { %1348 = vmatpush1.bf16.msra.mxu0 %v2713_v19  ;;  %1308 = vmatprep.subr.bf16.mxu1 %v2714_v20  ;;  %v2740_v37 = vld [vmem:[#allocation5 + $0x324] ss:$16 sps:$4 sm:$0xff]   ;;  %v2743_v39 = vld [vmem:[#allocation5 + $0x320] ss:$16 sps:$4 sm:$0xff]   ;;  %v2795_v19 = vld [vmem:[#allocation5 + $0x48] ss:$16 sps:$4 sm:$0xff]  }
  0x5f   :  { %1349 = vmatprep.subr.bf16.mxu0 %v2716_v21  ;;  %v2744_v40 = vld [vmem:[#allocation5 + $0x144] ss:$16 sps:$4 sm:$0xff]   ;;  %v2748_v42 = vld [vmem:[#allocation5 + $0x140] ss:$16 sps:$4 sm:$0xff]   ;;  %v2803_v21 = vld [vmem:[#allocation5 + $0x6c] ss:$16 sps:$4 sm:$0xff]  }
  0x60   :  { %v2746_v41 = vld [vmem:[#allocation5 + $0x344] ss:$16 sps:$4 sm:$0xff]   ;;  %v2749_v43 = vld [vmem:[#allocation5 + $0x340] ss:$16 sps:$4 sm:$0xff]  }
  0x61   :  { %1309 = vmatpush1.bf16.msra.mxu1 %v2718_v22  ;;  %v2750_v44 = vld [vmem:[#allocation5 + $0x164] ss:$16 sps:$4 sm:$0xff]   ;;  %v2754_v47 = vld [vmem:[#allocation5 + $0x160] ss:$16 sps:$4 sm:$0xff]  }
  0x62   :  { %1350 = vmatpush1.bf16.msra.mxu0 %v2719_v23  ;;  %1310 = vmatprep.subr.bf16.mxu1 %v2720_v24  ;;  %v2752_v45 = vld [vmem:[#allocation5 + $0x364] ss:$16 sps:$4 sm:$0xff]   ;;  %v2755_v50 = vld [vmem:[#allocation5 + $0x360] ss:$16 sps:$4 sm:$0xff]   ;;  %v2801_v23 = vld [vmem:[#allocation5 + $0x68] ss:$16 sps:$4 sm:$0xff]  }
  0x63   :  { %1351 = vmatprep.subr.bf16.mxu0 %v2722_v25  ;;  %v83_v46 = vld [vmem:[#allocation2 + $0x8] sm:$0xff]  ;;  %v85_v49 = vld [vmem:[#allocation2 + $0x18] sm:$0xff]  ;;  %v2809_v25 = vld [vmem:[#allocation5 + $0x8c] ss:$16 sps:$4 sm:$0xff]  }
  0x64   :  { %v3324_v48 = vpack.c.bf16 %v83_v46, %v83_v46  ;;  %v2756_v51 = vld [vmem:[#allocation5 + $0x184] ss:$16 sps:$4 sm:$0xff]   ;;  %v3326_v52 = vpack.c.bf16 %v85_v49, %v85_v49  ;;  %v2760_v54 = vld [vmem:[#allocation5 + $0x180] ss:$16 sps:$4 sm:$0xff]   ;;  %v2837_v49 = vld [vmem:[#allocation5 + $0x128] ss:$16 sps:$4 sm:$0xff]  }
  0x65   :  { %1311 = vmatpush1.bf16.msra.mxu1 %v2724_v26  ;;  %v2758_v53 = vld [vmem:[#allocation5 + $0x384] ss:$16 sps:$4 sm:$0xff]   ;;  %v2761_v55 = vld [vmem:[#allocation5 + $0x380] ss:$16 sps:$4 sm:$0xff]  }
  0x66   :  { %1352 = vmatpush1.bf16.msra.mxu0 %v2725_v27  ;;  %1312 = vmatprep.subr.bf16.mxu1 %v2726_v28  ;;  %v2762_v56 = vld [vmem:[#allocation5 + $0x1a4] ss:$16 sps:$4 sm:$0xff]   ;;  %v2766_v58 = vld [vmem:[#allocation5 + $0x1a0] ss:$16 sps:$4 sm:$0xff]   ;;  %v2807_v27 = vld [vmem:[#allocation5 + $0x88] ss:$16 sps:$4 sm:$0xff]  }
  0x67   :  { %1353 = vmatprep.subr.bf16.mxu0 %v2728_v29  ;;  %1330 = vmatprep.mubr.bf16.mxu1 %v3324_v48  ;;  %v2764_v57 = vld [vmem:[#allocation5 + $0x3a4] ss:$16 sps:$4 sm:$0xff]   ;;  %v2767_v59 = vld [vmem:[#allocation5 + $0x3a0] ss:$16 sps:$4 sm:$0xff]   ;;  %v2815_v29 = vld [vmem:[#allocation5 + $0xac] ss:$16 sps:$4 sm:$0xff]  }
  0x68   :  { %1371 = vmatprep.mubr.bf16.mxu0 %v3326_v52  ;;  %v2768_v60 = vld [vmem:[#allocation5 + $0x1c4] ss:$16 sps:$4 sm:$0xff]   ;;  %v2772_v62 = vld [vmem:[#allocation5 + $0x1c0] ss:$16 sps:$4 sm:$0xff]  }
  0x69   :  { %1313 = vmatpush1.bf16.msra.mxu1 %v2730_v30  ;;  %v2770_v61 = vld [vmem:[#allocation5 + $0x3c4] ss:$16 sps:$4 sm:$0xff]   ;;  %v2773_v63 = vld [vmem:[#allocation5 + $0x3c0] ss:$16 sps:$4 sm:$0xff]  }
  0x6a   :  { %1354 = vmatpush1.bf16.msra.mxu0 %v2731_v31  ;;  %1314 = vmatprep.subr.bf16.mxu1 %v2732_v32  ;;  %v2774_v0 = vld [vmem:[#allocation5 + $0x1e4] ss:$16 sps:$4 sm:$0xff]   ;;  %v2778_v2 = vld [vmem:[#allocation5 + $0x1e0] ss:$16 sps:$4 sm:$0xff]   ;;  %v2813_v31 = vld [vmem:[#allocation5 + $0xa8] ss:$16 sps:$4 sm:$0xff]  }
  0x6b   :  { %1355 = vmatprep.subr.bf16.mxu0 %v2734_v33  ;;  %v2776_v1 = vld [vmem:[#allocation5 + $0x3e4] ss:$16 sps:$4 sm:$0xff]   ;;  %v2779_v3 = vld [vmem:[#allocation5 + $0x3e0] ss:$16 sps:$4 sm:$0xff]   ;;  %v2821_v33 = vld [vmem:[#allocation5 + $0xcc] ss:$16 sps:$4 sm:$0xff]  }
  0x6c   :  { %v2782_v5 = vld [vmem:[#allocation5 + $0x404] ss:$16 sps:$4 sm:$0xff]   ;;  %v2780_v9 = vld [vmem:[#allocation5 + $0x400] ss:$16 sps:$4 sm:$0xff]  }
  0x6d   :  { %1315 = vmatpush1.bf16.msra.mxu1 %v2736_v34  ;;  %v2788_v12 = vld [vmem:[#allocation5 + $0x424] ss:$16 sps:$4 sm:$0xff]   ;;  %v2786_v14 = vld [vmem:[#allocation5 + $0x420] ss:$16 sps:$4 sm:$0xff]  }
  0x6e   :  { %1356 = vmatpush1.bf16.msra.mxu0 %v2737_v35  ;;  %1316 = vmatprep.subr.bf16.mxu1 %v2738_v36  ;;  %v2794_v16 = vld [vmem:[#allocation5 + $0x444] ss:$16 sps:$4 sm:$0xff]   ;;  %v2792_v18 = vld [vmem:[#allocation5 + $0x440] ss:$16 sps:$4 sm:$0xff]  }
  0x6f   :  { %1357 = vmatprep.subr.bf16.mxu0 %v2740_v37  ;;  %v2800_v20 = vld [vmem:[#allocation5 + $0x464] ss:$16 sps:$4 sm:$0xff]   ;;  %v2798_v22 = vld [vmem:[#allocation5 + $0x460] ss:$16 sps:$4 sm:$0xff]   ;;  %v2819_v37 = vld [vmem:[#allocation5 + $0xc8] ss:$16 sps:$4 sm:$0xff]  }
  0x70   :  { %v2806_v24 = vld [vmem:[#allocation5 + $0x484] ss:$16 sps:$4 sm:$0xff]   ;;  %v2804_v26 = vld [vmem:[#allocation5 + $0x480] ss:$16 sps:$4 sm:$0xff]  }
  0x71   :  { %1317 = vmatpush1.bf16.msra.mxu1 %v2742_v38  ;;  %v2812_v28 = vld [vmem:[#allocation5 + $0x4a4] ss:$16 sps:$4 sm:$0xff]   ;;  %v2810_v30 = vld [vmem:[#allocation5 + $0x4a0] ss:$16 sps:$4 sm:$0xff]  }
  0x72   :  { %1358 = vmatpush1.bf16.msra.mxu0 %v2743_v39  ;;  %1318 = vmatprep.subr.bf16.mxu1 %v2744_v40  ;;  %v2818_v32 = vld [vmem:[#allocation5 + $0x4c4] ss:$16 sps:$4 sm:$0xff]   ;;  %v2816_v36 = vld [vmem:[#allocation5 + $0x4c0] ss:$16 sps:$4 sm:$0xff]   ;;  %v2827_v39 = vld [vmem:[#allocation5 + $0xec] ss:$16 sps:$4 sm:$0xff]  }
  0x73   :  { %1359 = vmatprep.subr.bf16.mxu0 %v2746_v41  ;;  %v87_v34 = vld [vmem:[#allocation2 + $0x28] sm:$0xff]  ;;  %v2825_v41 = vld [vmem:[#allocation5 + $0xe8] ss:$16 sps:$4 sm:$0xff]  }
  0x74   :  { %v3337_v35 = vpack.c.bf16 %v87_v34, %v87_v34  ;;  %v2824_v38 = vld [vmem:[#allocation5 + $0x4e4] ss:$16 sps:$4 sm:$0xff]   ;;  %v2822_v40 = vld [vmem:[#allocation5 + $0x4e0] ss:$16 sps:$4 sm:$0xff]   ;;  %v2902_v34 = vld [vmem:[#allocation5 + $0x2ec] ss:$16 sps:$4 sm:$0xff]  }
  0x75   :  { %1319 = vmatpush1.bf16.msra.mxu1 %v2748_v42  ;;  %v2830_v42 = vld [vmem:[#allocation5 + $0x504] ss:$16 sps:$4 sm:$0xff]  }
  0x76   :  { %1360 = vmatpush1.bf16.msra.mxu0 %v2749_v43  ;;  %1320 = vmatprep.subr.bf16.mxu1 %v2750_v44  ;;  %v2833_v43 = vld [vmem:[#allocation5 + $0x10c] ss:$16 sps:$4 sm:$0xff]   ;;  %v2828_v44 = vld [vmem:[#allocation5 + $0x500] ss:$16 sps:$4 sm:$0xff]   ;;  %v2836_v46 = vld [vmem:[#allocation5 + $0x524] ss:$16 sps:$4 sm:$0xff]  }
  0x77   :  { %1361 = vmatprep.subr.bf16.mxu0 %v2752_v45  ;;  %v2831_v45 = vld [vmem:[#allocation5 + $0x108] ss:$16 sps:$4 sm:$0xff]  }
  0x79   :  { %1321 = vmatpush1.bf16.msra.mxu1 %v2754_v47  ;;  %v2839_v47 = vld [vmem:[#allocation5 + $0x12c] ss:$16 sps:$4 sm:$0xff]  }
  0x7a   :  { %1362 = vmatpush1.bf16.msra.mxu0 %v2755_v50  ;;  %1322 = vmatprep.subr.bf16.mxu1 %v2756_v51  ;;  %v2842_v50 = vld [vmem:[#allocation5 + $0x544] ss:$16 sps:$4 sm:$0xff]   ;;  %v2845_v51 = vld [vmem:[#allocation5 + $0x14c] ss:$16 sps:$4 sm:$0xff]  }
  0x7b   :  { %1363 = vmatprep.subr.bf16.mxu0 %v2758_v53  ;;  %v2840_v53 = vld [vmem:[#allocation5 + $0x540] ss:$16 sps:$4 sm:$0xff]  }
  0x7d   :  { %1323 = vmatpush1.bf16.msra.mxu1 %v2760_v54  ;;  %v2843_v54 = vld [vmem:[#allocation5 + $0x148] ss:$16 sps:$4 sm:$0xff]  }
  0x7e   :  { %1364 = vmatpush1.bf16.msra.mxu0 %v2761_v55  ;;  %1324 = vmatprep.subr.bf16.mxu1 %v2762_v56  ;;  %v2848_v55 = vld [vmem:[#allocation5 + $0x564] ss:$16 sps:$4 sm:$0xff]   ;;  %v2851_v56 = vld [vmem:[#allocation5 + $0x16c] ss:$16 sps:$4 sm:$0xff]  }
  0x7f   :  { %1365 = vmatprep.subr.bf16.mxu0 %v2764_v57  ;;  %v2846_v57 = vld [vmem:[#allocation5 + $0x560] ss:$16 sps:$4 sm:$0xff]  }
  0x81   :  { %1325 = vmatpush1.bf16.msra.mxu1 %v2766_v58  ;;  %v2849_v58 = vld [vmem:[#allocation5 + $0x168] ss:$16 sps:$4 sm:$0xff]  }
  0x82   :  { %1366 = vmatpush1.bf16.msra.mxu0 %v2767_v59  ;;  %1326 = vmatprep.subr.bf16.mxu1 %v2768_v60  ;;  %v2854_v59 = vld [vmem:[#allocation5 + $0x584] ss:$16 sps:$4 sm:$0xff]   ;;  %v2857_v60 = vld [vmem:[#allocation5 + $0x18c] ss:$16 sps:$4 sm:$0xff]  }
  0x83   :  { %1367 = vmatprep.subr.bf16.mxu0 %v2770_v61  ;;  %v2852_v61 = vld [vmem:[#allocation5 + $0x580] ss:$16 sps:$4 sm:$0xff]  }
  0x85   :  { %1327 = vmatpush1.bf16.msra.mxu1 %v2772_v62  ;;  %v2855_v62 = vld [vmem:[#allocation5 + $0x188] ss:$16 sps:$4 sm:$0xff]  }
  0x86   :  { %1368 = vmatpush1.bf16.msra.mxu0 %v2773_v63  ;;  %1328 = vmatprep.subr.bf16.mxu1 %v2774_v0  ;;  %v2860_v63 = vld [vmem:[#allocation5 + $0x5a4] ss:$16 sps:$4 sm:$0xff]   ;;  %v2863_v0 = vld [vmem:[#allocation5 + $0x1ac] ss:$16 sps:$4 sm:$0xff]  }
  0x87   :  { %1369 = vmatprep.subr.bf16.mxu0 %v2776_v1  ;;  %v2858_v1 = vld [vmem:[#allocation5 + $0x5a0] ss:$16 sps:$4 sm:$0xff]  }
  0x89   :  { %1329 = vmatpush1.bf16.msra.mxu1 %v2778_v2  ;;  %v2861_v2 = vld [vmem:[#allocation5 + $0x1a8] ss:$16 sps:$4 sm:$0xff]  }
  0x8a   :  { %1370 = vmatpush1.bf16.msra.mxu0 %v2779_v3  ;;  %1462 = vmatprep.subr.bf16.mxu1 %v2785_v7  ;;  %v2866_v3 = vld [vmem:[#allocation5 + $0x5c4] ss:$16 sps:$4 sm:$0xff]  }
  0x8b   :  { %1380 = vmatprep.subr.bf16.mxu0 %v2782_v5  ;;  %v2864_v5 = vld [vmem:[#allocation5 + $0x5c0] ss:$16 sps:$4 sm:$0xff]   ;;  %v2872_v7 = vld [vmem:[#allocation5 + $0x5e4] ss:$16 sps:$4 sm:$0xff]  }
  0x8c   :  { %1331 = vmatmul.mubr.bf16.vlgmr.msra.gmra.mrb[0].mxu1 %v3330_v8 }
  0x8d   :  { %1372 = vmatmul.mubr.bf16.vlgmr.msra.gmra.mrb[0].mxu0 %v3332_v11  ;;  %1463 = vmatpush1.bf16.msra.mxu1 %v2783_v10  ;;  %v2870_v10 = vld [vmem:[#allocation5 + $0x5e0] ss:$16 sps:$4 sm:$0xff]  }
  0x8e   :  { %1381 = vmatpush1.bf16.msra.mxu0 %v2780_v9  ;;  %1464 = vmatprep.subr.bf16.mxu1 %v2791_v13  ;;  %v2875_v9 = vld [vmem:[#allocation5 + $0x1ec] ss:$16 sps:$4 sm:$0xff]  }
  0x8f   :  { %1382 = vmatprep.subr.bf16.mxu0 %v2788_v12  ;;  %1494 = vmatprep.mubr.bf16.mxu1 %v3324_v48  ;;  %v2834_v48 = vld [vmem:[#allocation5 + $0x520] ss:$16 sps:$4 sm:$0xff]   ;;  %v2873_v12 = vld [vmem:[#allocation5 + $0x1e8] ss:$16 sps:$4 sm:$0xff]  }
  0x90   :  { %1412 = vmatprep.mubr.bf16.mxu0 %v3337_v35  ;;  %v86_v13 = vld [vmem:[#allocation2 + $0x20] sm:$0xff] }
  0x91   :  { %1465 = vmatpush1.bf16.msra.mxu1 %v2789_v15  ;;  %v2884_v15 = vld [vmem:[#allocation5 + $0x604] ss:$16 sps:$4 sm:$0xff]  }
  0x92   :  { %1383 = vmatpush1.bf16.msra.mxu0 %v2786_v14  ;;  %1466 = vmatprep.subr.bf16.mxu1 %v2797_v17  ;;  %v2878_v14 = vld [vmem:[#allocation5 + $0x20c] ss:$16 sps:$4 sm:$0xff]   ;;  %v2876_v17 = vld [vmem:[#allocation5 + $0x208] ss:$16 sps:$4 sm:$0xff]  }
  0x93   :  { %1384 = vmatprep.subr.bf16.mxu0 %v2794_v16  ;;  %v3340_v16 = vpack.c.bf16 %v86_v13, %v86_v13  ;;  %v2927_v13 = vld [vmem:[#allocation5 + $0x408] ss:$16 sps:$4 sm:$0xff]  }
  0x95   :  { %1467 = vmatpush1.bf16.msra.mxu1 %v2795_v19  ;;  %v2881_v19 = vld [vmem:[#allocation5 + $0x22c] ss:$16 sps:$4 sm:$0xff]  }
  0x96   :  { %1385 = vmatpush1.bf16.msra.mxu0 %v2792_v18  ;;  %1468 = vmatprep.subr.bf16.mxu1 %v2803_v21  ;;  %v2882_v18 = vld [vmem:[#allocation5 + $0x600] ss:$16 sps:$4 sm:$0xff]   ;;  %v2879_v21 = vld [vmem:[#allocation5 + $0x228] ss:$16 sps:$4 sm:$0xff]  }
  0x97   :  { %1386 = vmatprep.subr.bf16.mxu0 %v2800_v20  ;;  %v2974_v20 = vld [vmem:[#allocation5 + $0x60c] ss:$16 sps:$4 sm:$0xff]  }
  0x99   :  { %1469 = vmatpush1.bf16.msra.mxu1 %v2801_v23  ;;  %v3234_v23 = vmov 0  }
  0x9a   :  { %1387 = vmatpush1.bf16.msra.mxu0 %v2798_v22  ;;  %1470 = vmatprep.subr.bf16.mxu1 %v2809_v25  ;;  %v2887_v22 = vld [vmem:[#allocation5 + $0x24c] ss:$16 sps:$4 sm:$0xff]  }
  0x9b   :  { %1388 = vmatprep.subr.bf16.mxu0 %v2806_v24  ;;  %v2885_v24 = vld [vmem:[#allocation5 + $0x248] ss:$16 sps:$4 sm:$0xff]  }
  0x9c   :  { %v88_v25 = vld [vmem:[#allocation2 + $0x30] sm:$0xff] }
  0x9d   :  { %1471 = vmatpush1.bf16.msra.mxu1 %v2807_v27  ;;  %v2888_v27 = vld [vmem:[#allocation5 + $0x268] ss:$16 sps:$4 sm:$0xff]  }
  0x9e   :  { %1389 = vmatpush1.bf16.msra.mxu0 %v2804_v26  ;;  %1472 = vmatprep.subr.bf16.mxu1 %v2815_v29  ;;  %v2890_v26 = vld [vmem:[#allocation5 + $0x26c] ss:$16 sps:$4 sm:$0xff]   ;;  %v95_v29 = vpack.c.bf16 %v88_v25, %v88_v25 }
  0x9f   :  { %1390 = vmatprep.subr.bf16.mxu0 %v2812_v28  ;;  %v2972_v28 = vld [vmem:[#allocation5 + $0x608] ss:$16 sps:$4 sm:$0xff]   ;;  %v2950_v25 = vld [vmem:[#allocation5 + $0x4ec] ss:$16 sps:$4 sm:$0xff]  }
  0xa1   :  { %1473 = vmatpush1.bf16.msra.mxu1 %v2813_v31  ;;  %v2896_v31 = vld [vmem:[#allocation5 + $0x2ac] ss:$16 sps:$4 sm:$0xff]  }
  0xa2   :  { %1391 = vmatpush1.bf16.msra.mxu0 %v2810_v30  ;;  %1474 = vmatprep.subr.bf16.mxu1 %v2821_v33  ;;  %v2891_v30 = vld [vmem:[#allocation5 + $0x288] ss:$16 sps:$4 sm:$0xff]  }
  0xa3   :  { %1392 = vmatprep.subr.bf16.mxu0 %v2818_v32  ;;  %v2894_v32 = vld [vmem:[#allocation5 + $0x2a8] ss:$16 sps:$4 sm:$0xff]  }
  0xa4   :  { %v2897_v33 = vld [vmem:[#allocation5 + $0x2c8] ss:$16 sps:$4 sm:$0xff]  }
  0xa5   :  { %1475 = vmatpush1.bf16.msra.mxu1 %v2819_v37  ;;  %v2980_v37 = vld [vmem:[#allocation7 + $0x4] ss:$8 sps:$4 sm:$0xff]  }
  0xa6   :  { %1393 = vmatpush1.bf16.msra.mxu0 %v2816_v36  ;;  %1476 = vmatprep.subr.bf16.mxu1 %v2827_v39  ;;  %v2978_v36 = vld [vmem:[#allocation7] ss:$8 sps:$4 sm:$0xff]  }
  0xa7   :  { %1394 = vmatprep.subr.bf16.mxu0 %v2824_v38  ;;  %v2983_v38 = vld [vmem:[#allocation7 + $0x14] ss:$8 sps:$4 sm:$0xff]   ;;  %v2900_v39 = vld [vmem:[#allocation5 + $0x2e8] ss:$16 sps:$4 sm:$0xff]  }
  0xa9   :  { %1477 = vmatpush1.bf16.msra.mxu1 %v2825_v41  ;;  %v2905_v41 = vld [vmem:[#allocation5 + $0x30c] ss:$16 sps:$4 sm:$0xff]  }
  0xaa   :  { %1395 = vmatpush1.bf16.msra.mxu0 %v2822_v40  ;;  %1478 = vmatprep.subr.bf16.mxu1 %v2833_v43  ;;  %v2981_v40 = vld [vmem:[#allocation7 + $0x10] ss:$8 sps:$4 sm:$0xff]  }
  0xab   :  { %1396 = vmatprep.subr.bf16.mxu0 %v2830_v42  ;;  %v2986_v42 = vld [vmem:[#allocation7 + $0x24] ss:$8 sps:$4 sm:$0xff]   ;;  %v2903_v43 = vld [vmem:[#allocation5 + $0x308] ss:$16 sps:$4 sm:$0xff]  }
  0xad   :  { %1479 = vmatpush1.bf16.msra.mxu1 %v2831_v45  ;;  %v2984_v45 = vld [vmem:[#allocation7 + $0x20] ss:$8 sps:$4 sm:$0xff]  }
  0xae   :  { %1397 = vmatpush1.bf16.msra.mxu0 %v2828_v44  ;;  %1480 = vmatprep.subr.bf16.mxu1 %v2839_v47  ;;  %v2908_v44 = vld [vmem:[#allocation5 + $0x32c] ss:$16 sps:$4 sm:$0xff]   ;;  %v2906_v47 = vld [vmem:[#allocation5 + $0x328] ss:$16 sps:$4 sm:$0xff]  }
  0xaf   :  { %1398 = vmatprep.subr.bf16.mxu0 %v2836_v46  ;;  %v2989_v46 = vld [vmem:[#allocation7 + $0x34] ss:$8 sps:$4 sm:$0xff]  }
  0xb1   :  { %1481 = vmatpush1.bf16.msra.mxu1 %v2837_v49  ;;  %v2911_v49 = vld [vmem:[#allocation5 + $0x34c] ss:$16 sps:$4 sm:$0xff]  }
  0xb2   :  { %1399 = vmatpush1.bf16.msra.mxu0 %v2834_v48  ;;  %1482 = vmatprep.subr.bf16.mxu1 %v2845_v51  ;;  %v2987_v48 = vld [vmem:[#allocation7 + $0x30] ss:$8 sps:$4 sm:$0xff]  }
  0xb3   :  { %1400 = vmatprep.subr.bf16.mxu0 %v2842_v50  ;;  %v2992_v50 = vld [vmem:[#allocation7 + $0x44] ss:$8 sps:$4 sm:$0xff]   ;;  %v2909_v51 = vld [vmem:[#allocation5 + $0x348] ss:$16 sps:$4 sm:$0xff]  }
  0xb5   :  { %1483 = vmatpush1.bf16.msra.mxu1 %v2843_v54  ;;  %v2914_v54 = vld [vmem:[#allocation5 + $0x36c] ss:$16 sps:$4 sm:$0xff]  }
  0xb6   :  { %1401 = vmatpush1.bf16.msra.mxu0 %v2840_v53  ;;  %1484 = vmatprep.subr.bf16.mxu1 %v2851_v56  ;;  %v2990_v53 = vld [vmem:[#allocation7 + $0x40] ss:$8 sps:$4 sm:$0xff]  }
  0xb7   :  { %1402 = vmatprep.subr.bf16.mxu0 %v2848_v55  ;;  %v2995_v55 = vld [vmem:[#allocation7 + $0x54] ss:$8 sps:$4 sm:$0xff]   ;;  %v2912_v56 = vld [vmem:[#allocation5 + $0x368] ss:$16 sps:$4 sm:$0xff]  }
  0xb9   :  { %1485 = vmatpush1.bf16.msra.mxu1 %v2849_v58  ;;  %v2917_v58 = vld [vmem:[#allocation5 + $0x38c] ss:$16 sps:$4 sm:$0xff]  }
  0xba   :  { %1403 = vmatpush1.bf16.msra.mxu0 %v2846_v57  ;;  %1486 = vmatprep.subr.bf16.mxu1 %v2857_v60  ;;  %v2993_v57 = vld [vmem:[#allocation7 + $0x50] ss:$8 sps:$4 sm:$0xff]  }
  0xbb   :  { %1404 = vmatprep.subr.bf16.mxu0 %v2854_v59  ;;  %v2998_v59 = vld [vmem:[#allocation7 + $0x64] ss:$8 sps:$4 sm:$0xff]   ;;  %v2915_v60 = vld [vmem:[#allocation5 + $0x388] ss:$16 sps:$4 sm:$0xff]  }
  0xbd   :  { %1487 = vmatpush1.bf16.msra.mxu1 %v2855_v62  ;;  %v2920_v62 = vld [vmem:[#allocation5 + $0x3ac] ss:$16 sps:$4 sm:$0xff]  }
  0xbe   :  { %1405 = vmatpush1.bf16.msra.mxu0 %v2852_v61  ;;  %1488 = vmatprep.subr.bf16.mxu1 %v2863_v0  ;;  %v2996_v61 = vld [vmem:[#allocation7 + $0x60] ss:$8 sps:$4 sm:$0xff]  }
  0xbf   :  { %1406 = vmatprep.subr.bf16.mxu0 %v2860_v63  ;;  %v3001_v63 = vld [vmem:[#allocation7 + $0x74] ss:$8 sps:$4 sm:$0xff]   ;;  %v2918_v0 = vld [vmem:[#allocation5 + $0x3a8] ss:$16 sps:$4 sm:$0xff]  }
  0xc1   :  { %1489 = vmatpush1.bf16.msra.mxu1 %v2861_v2  ;;  %v2923_v2 = vld [vmem:[#allocation5 + $0x3cc] ss:$16 sps:$4 sm:$0xff]  }
  0xc2   :  { %1407 = vmatpush1.bf16.msra.mxu0 %v2858_v1  ;;  %1490 = vmatprep.subr.bf16.mxu1 %v2869_v4  ;;  %v2999_v1 = vld [vmem:[#allocation7 + $0x70] ss:$8 sps:$4 sm:$0xff]  }
  0xc3   :  { %1408 = vmatprep.subr.bf16.mxu0 %v2866_v3  ;;  %v3004_v3 = vld [vmem:[#allocation7 + $0x84] ss:$8 sps:$4 sm:$0xff]   ;;  %v2921_v4 = vld [vmem:[#allocation5 + $0x3c8] ss:$16 sps:$4 sm:$0xff]  }
  0xc5   :  { %1491 = vmatpush1.bf16.msra.mxu1 %v2867_v6  ;;  %v2926_v6 = vld [vmem:[#allocation5 + $0x3ec] ss:$16 sps:$4 sm:$0xff]  }
  0xc6   :  { %1409 = vmatpush1.bf16.msra.mxu0 %v2864_v5  ;;  %1492 = vmatprep.subr.bf16.mxu1 %v2875_v9  ;;  %v3002_v5 = vld [vmem:[#allocation7 + $0x80] ss:$8 sps:$4 sm:$0xff]  }
  0xc7   :  { %1410 = vmatprep.subr.bf16.mxu0 %v2872_v7  ;;  %v3007_v7 = vld [vmem:[#allocation7 + $0x94] ss:$8 sps:$4 sm:$0xff]   ;;  %v2924_v9 = vld [vmem:[#allocation5 + $0x3e8] ss:$16 sps:$4 sm:$0xff]  }
  0xc9   :  { %1493 = vmatpush1.bf16.msra.mxu1 %v2873_v12  ;;  %v2929_v12 = vld [vmem:[#allocation5 + $0x40c] ss:$16 sps:$4 sm:$0xff]  }
  0xca   :  { %1411 = vmatpush1.bf16.msra.mxu0 %v2870_v10  ;;  %1503 = vmatprep.subr.bf16.mxu1 %v2878_v14  ;;  %v3005_v10 = vld [vmem:[#allocation7 + $0x90] ss:$8 sps:$4 sm:$0xff]   ;;  %v2932_v14 = vld [vmem:[#allocation5 + $0x42c] ss:$16 sps:$4 sm:$0xff]  }
  0xcb   :  { %1421 = vmatprep.subr.bf16.mxu0 %v2884_v15  ;;  %v2930_v15 = vld [vmem:[#allocation5 + $0x428] ss:$16 sps:$4 sm:$0xff]  }
  0xcc   :  { %1495 = vmatmul.mubr.bf16.vlgmr.msra.gmra.mrb[4].mxu1 %v3330_v8  ;;  %v2893_v8 = vld [vmem:[#allocation5 + $0x28c] ss:$16 sps:$4 sm:$0xff]  }
  0xcd   :  { %1413 = vmatmul.mubr.bf16.vlgmr.msra.gmra.mrb[0].mxu0 %v3340_v16  ;;  %1504 = vmatpush1.bf16.msra.mxu1 %v2876_v17  ;;  %v2935_v17 = vld [vmem:[#allocation5 + $0x44c] ss:$16 sps:$4 sm:$0xff]  }
  0xce   :  { %1422 = vmatpush1.bf16.msra.mxu0 %v2882_v18  ;;  %1505 = vmatprep.subr.bf16.mxu1 %v2881_v19  ;;  %v2933_v18 = vld [vmem:[#allocation5 + $0x448] ss:$16 sps:$4 sm:$0xff]   ;;  %v2938_v19 = vld [vmem:[#allocation5 + $0x46c] ss:$16 sps:$4 sm:$0xff]  }
  0xcf   :  { %1453 = vmatprep.mubr.bf16.mxu0 %v3234_v23  ;;  %1535 = vmatprep.mubr.bf16.mxu1 %v3326_v52  ;;  %v2899_v52 = vld [vmem:[#allocation5 + $0x2cc] ss:$16 sps:$4 sm:$0xff]  }
  0xd0   :  { %1585 = vmatprep.subr.bf16.mxu0 %v2974_v20  ;;  %v2936_v20 = vld [vmem:[#allocation5 + $0x468] ss:$16 sps:$4 sm:$0xff]  }
  0xd1   :  { %1506 = vmatpush1.bf16.msra.mxu1 %v2879_v21  ;;  %v2941_v21 = vld [vmem:[#allocation5 + $0x48c] ss:$16 sps:$4 sm:$0xff]  }
  0xd2   :  { %1507 = vmatprep.subr.bf16.mxu1 %v2887_v22  ;;  %v2939_v22 = vld [vmem:[#allocation5 + $0x488] ss:$16 sps:$4 sm:$0xff]  }
  0xd5   :  { %1508 = vmatpush1.bf16.msra.mxu1 %v2885_v24  ;;  %v2947_v24 = vld [vmem:[#allocation5 + $0x4cc] ss:$16 sps:$4 sm:$0xff]  }
  0xd6   :  { %1509 = vmatprep.subr.bf16.mxu1 %v2890_v26  ;;  %v2948_v26 = vld [vmem:[#allocation5 + $0x4e8] ss:$16 sps:$4 sm:$0xff]  }
  0xd9   :  { %2537 = vmatmul.mubr.msk.bf16.vlgmr.msra.gmra.mrb[0].mxu0 %vm1294_vm0, %v95_v29  ;;  %1510 = vmatpush1.bf16.msra.mxu1 %v2888_v27  ;;  %v2953_v27 = vld [vmem:[#allocation5 + $0x50c] ss:$16 sps:$4 sm:$0xff]  }
  0xda   :  { %1586 = vmatpush1.bf16.msra.mxu0 %v2972_v28  ;;  %1511 = vmatprep.subr.bf16.mxu1 %v2893_v8  ;;  %v2951_v28 = vld [vmem:[#allocation5 + $0x508] ss:$16 sps:$4 sm:$0xff]   ;;  %v3010_v8 = vld [vmem:[#allocation7 + $0xa4] ss:$8 sps:$4 sm:$0xff]  }
  0xdb   :  { %1617 = vmatprep.mubr.bf16.mxu0 %v3234_v23  ;;  %2042 = vmatprep.subr.bf16.mxu0 %v2980_v37  ;;  %v2944_v23 = vld [vmem:[#allocation5 + $0x4ac] ss:$16 sps:$4 sm:$0xff]  }
  0xdc   :  { %v3016_v37 = vld [vmem:[#allocation7 + $0xc4] ss:$8 sps:$4 sm:$0xff]  }
  0xdd   :  { %1512 = vmatpush1.bf16.msra.mxu1 %v2891_v30  ;;  %v3008_v30 = vld [vmem:[#allocation7 + $0xa0] ss:$8 sps:$4 sm:$0xff]  }
  0xde   :  { %1513 = vmatprep.subr.bf16.mxu1 %v2896_v31  ;;  %v2954_v31 = vld [vmem:[#allocation5 + $0x528] ss:$16 sps:$4 sm:$0xff]  }
  0xe1   :  { %2538 = vmatmul.mubr.msk.bf16.vlgmr.msra.gmra.mrb[4].mxu0 %vm1294_vm0, %v95_v29  ;;  %1514 = vmatpush1.bf16.msra.mxu1 %v2894_v32  ;;  %v2956_v29 = vld [vmem:[#allocation5 + $0x52c] ss:$16 sps:$4 sm:$0xff]  }
  0xe2   :  { %1515 = vmatprep.subr.bf16.mxu1 %v2899_v52  ;;  %2043 = vmatpush1.bf16.msra.mxu0 %v2978_v36  ;;  %v2959_v32 = vld [vmem:[#allocation5 + $0x54c] ss:$16 sps:$4 sm:$0xff]  }
  0xe3   :  { %2044 = vmatprep.subr.bf16.mxu0 %v2983_v38  ;;  %v3013_v52 = vld [vmem:[#allocation7 + $0xb4] ss:$8 sps:$4 sm:$0xff]   ;;  %v3014_v38 = vld [vmem:[#allocation7 + $0xc0] ss:$8 sps:$4 sm:$0xff]  }
  0xe4   :  { %v2962_v36 = vld [vmem:[#allocation5 + $0x56c] ss:$16 sps:$4 sm:$0xff]  }
  0xe5   :  { %1516 = vmatpush1.bf16.msra.mxu1 %v2897_v33  ;;  %v3011_v33 = vld [vmem:[#allocation7 + $0xb0] ss:$8 sps:$4 sm:$0xff]  }
  0xe6   :  { %1517 = vmatprep.subr.bf16.mxu1 %v2902_v34  ;;  %2045 = vmatpush1.bf16.msra.mxu0 %v2981_v40  ;;  %v2957_v34 = vld [vmem:[#allocation5 + $0x548] ss:$16 sps:$4 sm:$0xff]   ;;  %v2965_v40 = vld [vmem:[#allocation5 + $0x58c] ss:$16 sps:$4 sm:$0xff]  }
  0xe7   :  { %2046 = vmatprep.subr.bf16.mxu0 %v2986_v42  ;;  %v3017_v42 = vld [vmem:[#allocation7 + $0xd0] ss:$8 sps:$4 sm:$0xff]  }
  0xe9   :  { %1518 = vmatpush1.bf16.msra.mxu1 %v2900_v39  ;;  %v2960_v39 = vld [vmem:[#allocation5 + $0x568] ss:$16 sps:$4 sm:$0xff]  }
  0xea   :  { %1519 = vmatprep.subr.bf16.mxu1 %v2905_v41  ;;  %2047 = vmatpush1.bf16.msra.mxu0 %v2984_v45  ;;  %v3019_v41 = vld [vmem:[#allocation7 + $0xd4] ss:$8 sps:$4 sm:$0xff]   ;;  %v3022_v45 = vld [vmem:[#allocation7 + $0xe4] ss:$8 sps:$4 sm:$0xff]  }
  0xeb   :  { %2048 = vmatprep.subr.bf16.mxu0 %v2989_v46  ;;  %v3020_v46 = vld [vmem:[#allocation7 + $0xe0] ss:$8 sps:$4 sm:$0xff]  }
  0xed   :  { %1520 = vmatpush1.bf16.msra.mxu1 %v2903_v43  ;;  %v2963_v43 = vld [vmem:[#allocation5 + $0x588] ss:$16 sps:$4 sm:$0xff]  }
  0xee   :  { %1521 = vmatprep.subr.bf16.mxu1 %v2908_v44  ;;  %2049 = vmatpush1.bf16.msra.mxu0 %v2987_v48  ;;  %v2968_v44 = vld [vmem:[#allocation5 + $0x5ac] ss:$16 sps:$4 sm:$0xff]  }
  0xef   :  { %2050 = vmatprep.subr.bf16.mxu0 %v2992_v50  ;;  %v2971_v48 = vld [vmem:[#allocation5 + $0x5cc] ss:$16 sps:$4 sm:$0xff]   ;;  %v3023_v50 = vld [vmem:[#allocation7 + $0xf0] ss:$8 sps:$4 sm:$0xff]  }
  0xf1   :  { %1522 = vmatpush1.bf16.msra.mxu1 %v2906_v47  ;;  %v2966_v47 = vld [vmem:[#allocation5 + $0x5a8] ss:$16 sps:$4 sm:$0xff]  }
  0xf2   :  { %1523 = vmatprep.subr.bf16.mxu1 %v2911_v49  ;;  %2051 = vmatpush1.bf16.msra.mxu0 %v2990_v53  ;;  %v3025_v49 = vld [vmem:[#allocation7 + $0xf4] ss:$8 sps:$4 sm:$0xff]  }
  0xf3   :  { %2052 = vmatprep.subr.bf16.mxu0 %v2995_v55  ;;  %v2977_v53 = vld [vmem:[#allocation5 + $0x5ec] ss:$16 sps:$4 sm:$0xff]   ;;  %v2975_v55 = vld [vmem:[#allocation5 + $0x5e8] ss:$16 sps:$4 sm:$0xff]  }
  0xf5   :  { %1524 = vmatpush1.bf16.msra.mxu1 %v2909_v51  ;;  %v2969_v51 = vld [vmem:[#allocation5 + $0x5c8] ss:$16 sps:$4 sm:$0xff]  }
  0xf6   :  { %1525 = vmatprep.subr.bf16.mxu1 %v2914_v54  ;;  %2053 = vmatpush1.bf16.msra.mxu0 %v2993_v57  ;;  %v3028_v54 = vld [vmem:[#allocation7 + $0x104] ss:$8 sps:$4 sm:$0xff]  }
  0xf7   :  { %2054 = vmatprep.subr.bf16.mxu0 %v2998_v59 }
  0xf9   :  { %1526 = vmatpush1.bf16.msra.mxu1 %v2912_v56 }
  0xfa   :  { %1527 = vmatprep.subr.bf16.mxu1 %v2917_v58  ;;  %2055 = vmatpush1.bf16.msra.mxu0 %v2996_v61 }
  0xfb   :  { %2056 = vmatprep.subr.bf16.mxu0 %v3001_v63  ;;  %v3355_v63 = vld [vmem:[%s3399_s2] sm:$0xf] }
  0xfd   :  { %1528 = vmatpush1.bf16.msra.mxu1 %v2915_v60  ;;  %v294_v60 = vlaneseq }
  0xfe   :  { %1529 = vmatprep.subr.bf16.mxu1 %v2920_v62  ;;  %2057 = vmatpush1.bf16.msra.mxu0 %v2999_v1 }
  0xff   :  { %2058 = vmatprep.subr.bf16.mxu0 %v3004_v3  ;;  %v3349_v61 = vshrl.u32 %v294_v60, 7 }
 0x101   :  { %1530 = vmatpush1.bf16.msra.mxu1 %v2918_v0  ;;  %v296_v62 = vsub.s32 0, %v3349_v61  ;;  %v300_v0 = vsub.s32 1, %v3349_v61 }
 0x102   :  { %1531 = vmatprep.subr.bf16.mxu1 %v2923_v2  ;;  %2059 = vmatpush1.bf16.msra.mxu0 %v3002_v5 }
 0x103   :  { %2060 = vmatprep.subr.bf16.mxu0 %v3007_v7  ;;  %v301_v1 = vrot.slane %v3355_v63, %v300_v0 }
 0x105   :  { %1532 = vmatpush1.bf16.msra.mxu1 %v2921_v4 }
 0x106   :  { %1533 = vmatprep.subr.bf16.mxu1 %v2926_v6  ;;  %2061 = vmatpush1.bf16.msra.mxu0 %v3005_v10 }
 0x107   :  { %2062 = vmatprep.subr.bf16.mxu0 %v3010_v8  ;;  %v3031_v8 = vld [vmem:[#allocation7 + $0x114] ss:$8 sps:$4 sm:$0xff]  }
 0x109   :  { %1534 = vmatpush1.bf16.msra.mxu1 %v2924_v9 }
 0x10a   :  { %1544 = vmatprep.subr.bf16.mxu1 %v2929_v12  ;;  %2063 = vmatpush1.bf16.msra.mxu0 %v3008_v30  ;;  %v3029_v30 = vld [vmem:[#allocation7 + $0x110] ss:$8 sps:$4 sm:$0xff]  }
 0x10b   :  { %2064 = vmatprep.subr.bf16.mxu0 %v3013_v52  ;;  %v3037_v52 = vld [vmem:[#allocation7 + $0x134] ss:$8 sps:$4 sm:$0xff]  }
 0x10c   :  { %1536 = vmatmul.mubr.bf16.vlgmr.msra.gmra.mrb[4].mxu1 %v3332_v11  ;;  %v2942_v11 = vld [vmem:[#allocation5 + $0x4a8] ss:$16 sps:$4 sm:$0xff]  }
 0x10d   :  { %1545 = vmatpush1.bf16.msra.mxu1 %v2927_v13  ;;  %1576 = vmatprep.mubr.bf16.mxu1 %v3337_v35  ;;  %v2945_v35 = vld [vmem:[#allocation5 + $0x4c8] ss:$16 sps:$4 sm:$0xff]  }
 0x10e   :  { %1546 = vmatprep.subr.bf16.mxu1 %v2932_v14  ;;  %2065 = vmatpush1.bf16.msra.mxu0 %v3011_v33  ;;  %v3035_v33 = vld [vmem:[#allocation7 + $0x130] ss:$8 sps:$4 sm:$0xff]  }
 0x10f   :  { %2066 = vmatprep.subr.bf16.mxu0 %v3016_v37  ;;  %v3043_v37 = vld [vmem:[#allocation7 + $0x154] ss:$8 sps:$4 sm:$0xff]  }
 0x111   :  { %1547 = vmatpush1.bf16.msra.mxu1 %v2930_v15 }
 0x112   :  { %1548 = vmatprep.subr.bf16.mxu1 %v2935_v17  ;;  %2067 = vmatpush1.bf16.msra.mxu0 %v3014_v38  ;;  %v3041_v38 = vld [vmem:[#allocation7 + $0x150] ss:$8 sps:$4 sm:$0xff]  }
 0x113   :  { %2068 = vmatprep.subr.bf16.mxu0 %v3019_v41  ;;  %v3049_v41 = vld [vmem:[#allocation7 + $0x174] ss:$8 sps:$4 sm:$0xff]  }
 0x115   :  { %1549 = vmatpush1.bf16.msra.mxu1 %v2933_v18 }
 0x116   :  { %1550 = vmatprep.subr.bf16.mxu1 %v2938_v19  ;;  %2069 = vmatpush1.bf16.msra.mxu0 %v3017_v42  ;;  %v3047_v42 = vld [vmem:[#allocation7 + $0x170] ss:$8 sps:$4 sm:$0xff]  }
 0x117   :  { %2070 = vmatprep.subr.bf16.mxu0 %v3022_v45  ;;  %v3055_v45 = vld [vmem:[#allocation7 + $0x194] ss:$8 sps:$4 sm:$0xff]  }
 0x119   :  { %1551 = vmatpush1.bf16.msra.mxu1 %v2936_v20 }
 0x11a   :  { %1552 = vmatprep.subr.bf16.mxu1 %v2941_v21  ;;  %2071 = vmatpush1.bf16.msra.mxu0 %v3020_v46  ;;  %v3074_v21 = vld [vmem:[#allocation8 + $0x40] sm:$0xff]   ;;  %v3053_v46 = vld [vmem:[#allocation7 + $0x190] ss:$8 sps:$4 sm:$0xff]  }
 0x11b   :  { %2072 = vmatprep.subr.bf16.mxu0 %v3025_v49  ;;  %v3061_v49 = vld [vmem:[#allocation7 + $0x1b4] ss:$8 sps:$4 sm:$0xff]  }
 0x11d   :  { %1553 = vmatpush1.bf16.msra.mxu1 %v2939_v22  ;;  %v3075_v22 = vld [vmem:[#allocation8] sm:$0xff]  }
 0x11e   :  { %1554 = vmatprep.subr.bf16.mxu1 %v2944_v23  ;;  %2073 = vmatpush1.bf16.msra.mxu0 %v3023_v50  ;;  %v3076_v23 = vld [vmem:[#allocation8 + $0x48] sm:$0xff]   ;;  %v3059_v50 = vld [vmem:[#allocation7 + $0x1b0] ss:$8 sps:$4 sm:$0xff]  }
 0x11f   :  { %2083 = vmatprep.subr.bf16.mxu0 %v3028_v54  ;;  %v3067_v54 = vld [vmem:[#allocation7 + $0x1d4] ss:$8 sps:$4 sm:$0xff]  }
 0x121   :  { %1555 = vmatpush1.bf16.msra.mxu1 %v2942_v11 }
 0x122   :  { %1556 = vmatprep.subr.bf16.mxu1 %v2947_v24  ;;  %v3077_v24 = vld [vmem:[#allocation8 + $0x8] sm:$0xff]  }
 0x125   :  { %1557 = vmatpush1.bf16.msra.mxu1 %v2945_v35 }
 0x126   :  { %1558 = vmatprep.subr.bf16.mxu1 %v2950_v25 }
 0x129   :  { %1559 = vmatpush1.bf16.msra.mxu1 %v2948_v26 }
 0x12a   :  { %1560 = vmatprep.subr.bf16.mxu1 %v2953_v27 }
 0x12d   :  { %1561 = vmatpush1.bf16.msra.mxu1 %v2951_v28  ;;  %v3026_v28 = vld [vmem:[#allocation7 + $0x100] ss:$8 sps:$4 sm:$0xff]  }
 0x12e   :  { %1562 = vmatprep.subr.bf16.mxu1 %v2956_v29 }
 0x131   :  { %1563 = vmatpush1.bf16.msra.mxu1 %v2954_v31  ;;  %v3034_v31 = vld [vmem:[#allocation7 + $0x124] ss:$8 sps:$4 sm:$0xff]  }
 0x132   :  { %1564 = vmatprep.subr.bf16.mxu1 %v2959_v32  ;;  %v3032_v32 = vld [vmem:[#allocation7 + $0x120] ss:$8 sps:$4 sm:$0xff]  }
 0x135   :  { %1565 = vmatpush1.bf16.msra.mxu1 %v2957_v34  ;;  %v3040_v34 = vld [vmem:[#allocation7 + $0x144] ss:$8 sps:$4 sm:$0xff]  }
 0x136   :  { %1566 = vmatprep.subr.bf16.mxu1 %v2962_v36  ;;  %v3038_v36 = vld [vmem:[#allocation7 + $0x140] ss:$8 sps:$4 sm:$0xff]  }
 0x139   :  { %1567 = vmatpush1.bf16.msra.mxu1 %v2960_v39  ;;  %v3046_v39 = vld [vmem:[#allocation7 + $0x164] ss:$8 sps:$4 sm:$0xff]  }
 0x13a   :  { %1568 = vmatprep.subr.bf16.mxu1 %v2965_v40  ;;  %v3044_v40 = vld [vmem:[#allocation7 + $0x160] ss:$8 sps:$4 sm:$0xff]  }
 0x13d   :  { %1569 = vmatpush1.bf16.msra.mxu1 %v2963_v43  ;;  %v3052_v43 = vld [vmem:[#allocation7 + $0x184] ss:$8 sps:$4 sm:$0xff]  }
 0x13e   :  { %1570 = vmatprep.subr.bf16.mxu1 %v2968_v44  ;;  %v3050_v44 = vld [vmem:[#allocation7 + $0x180] ss:$8 sps:$4 sm:$0xff]  }
 0x141   :  { %1571 = vmatpush1.bf16.msra.mxu1 %v2966_v47  ;;  %v3058_v47 = vld [vmem:[#allocation7 + $0x1a4] ss:$8 sps:$4 sm:$0xff]  }
 0x142   :  { %1572 = vmatprep.subr.bf16.mxu1 %v2971_v48  ;;  %v3056_v48 = vld [vmem:[#allocation7 + $0x1a0] ss:$8 sps:$4 sm:$0xff]  }
 0x145   :  { %1573 = vmatpush1.bf16.msra.mxu1 %v2969_v51  ;;  %v3064_v51 = vld [vmem:[#allocation7 + $0x1c4] ss:$8 sps:$4 sm:$0xff]  }
 0x146   :  { %1574 = vmatprep.subr.bf16.mxu1 %v2977_v53  ;;  %v3062_v53 = vld [vmem:[#allocation7 + $0x1c0] ss:$8 sps:$4 sm:$0xff]  }
 0x149   :  { %1575 = vmatpush1.bf16.msra.mxu1 %v2975_v55  ;;  %v3065_v55 = vld [vmem:[#allocation7 + $0x1d0] ss:$8 sps:$4 sm:$0xff]  }
 0x14a   :  { %2620 = vmatprep.subr.bf16.mxu1 %v3074_v21 }
 0x14c   :  { %1577 = vmatmul.mubr.bf16.vlgmr.msra.gmra.mrb[4].mxu1 %v3340_v16  ;;  %v297_v16 = vrot.slane %v3355_v63, %v296_v62 }
 0x14d   :  { %2621 = vmatpush3.bf16.msra.mxu1 %v3075_v22 }
 0x14e   :  { %2622 = vmatprep.subr.bf16.mxu1 %v3076_v23 }
 0x151   :  { %2623 = vmatpush3.bf16.msra.mxu1 %v3077_v24 }
 0x15f   :  { %v1332_v56 = vpop.f32.mrb[0].mxu1 }
 0x160   :  { %v1334_v57 = vpop.f32.mrb[1].mxu1  ;;  %v1333_v2 = vadd.f32 %v1332_v56, %v297_v16  ;;  %v3070_v56 = vld [vmem:[#allocation7 + $0x1e4] ss:$8 sps:$4 sm:$0xff]   ;;  %v304_v16 = vsub.s32 2, %v3349_v61 }
 0x161   :  { %v1336_v58 = vpop.f32.mrb[2].mxu1  ;;  %v1335_v3 = vadd.f32 %v1334_v57, %v301_v1  ;;  %v3068_v57 = vld [vmem:[#allocation7 + $0x1e0] ss:$8 sps:$4 sm:$0xff]   ;;  %v308_v1 = vsub.s32 3, %v3349_v61  ;;  %v2310_v61 = vand.u32 127, %v294_v60 }
 0x162   :  { %v1337_v59 = vpop.f32.mrb[3].mxu1  ;;  %v3073_v58 = vld [vmem:[#allocation7 + $0x1f4] ss:$8 sps:$4 sm:$0xff]  }
 0x163   :  { %v3071_v59 = vld [vmem:[#allocation7 + $0x1f0] ss:$8 sps:$4 sm:$0xff]   ;;  %vm2311_vm1 = vcmp.lt.s32.totalorder %v2310_v61, 10 }
 0x1ac   :  { %v1455_v4 = vpop.f32.mrb[0].mxu0 }
 0x1ad   :  { %v2643_v5 = vadd.f32 %v1455_v4, %v1333_v2  ;;  %v1457_v6 = vpop.f32.mrb[1].mxu0  ;;  %v305_v2 = vrot.slane %v3355_v63, %v304_v16 }
 0x1ae   :  { %v2645_v7 = vadd.f32 %v1457_v6, %v1335_v3  ;;  %v1459_v9 = vpop.f32.mrb[2].mxu0  ;;  %v309_v3 = vrot.slane %v3355_v63, %v308_v1 }
 0x1af   :  { %v1626_v10 = vmul.f32 0.5, %v2643_v5  ;;  %v1460_v12 = vpop.f32.mrb[3].mxu0 }
 0x1b0   :  { %v1627_v13 = vmul.f32 0.5, %v2645_v7 }
 0x1b1   :  { %v1630_v14 = vpack.c.bf16 %v1626_v10, %v1626_v10 }
 0x1b2   :  { %v1631_v15 = vpack.c.bf16 %v1627_v13, %v1627_v13 }
 0x1b3   :  { %3090 = vtanh.bf16 %v1630_v14 }
 0x1b4   :  { %3092 = vtanh.bf16 %v1631_v15  ;;  %v3364_v17 = vpop.f32.mrb[4].mxu0 }
 0x1b5   :  { %v3366_v18 = vpop.f32.mrb[5].mxu0 }
 0x1b6   :  { %v1623_v19 = vpop.f32.mrb[6].mxu0 }
 0x1b7   :  { %v1624_v20 = vpop.f32.mrb[7].mxu0 }
 0x1be   :  { %v3091_v11 = vpop.eup %3090 }
 0x1bf   :  { %v3093_v35 = vpop.eup %3092  ;;  %v1638_v25 = vmul.bf16 1056980736, %v3091_v11 }
 0x1c0   :  { %v1639_v26 = vmul.bf16 1056980736, %v3093_v35  ;;  %v3078_v35 = vld [vmem:[#allocation8 + $0x50] sm:$0xff]  }
 0x1c1   :  { %v1642_v29 = vadd.bf16 1056980736, %v1638_v25  ;;  %v3079_v25 = vld [vmem:[#allocation8 + $0x10] sm:$0xff]   ;;  %2624 = vmatprep.subr.bf16.mxu1 %v3078_v35 }
 0x1c2   :  { %v1643_v27 = vadd.bf16 1056980736, %v1639_v26  ;;  %2625 = vmatpush3.bf16.msra.mxu1 %v3079_v25  ;;  %v3082_v26 = vld [vmem:[#allocation8 + $0x60] sm:$0xff]  }
 0x1c4   :  { %2074 = vmatprep.mubr.bf16.mxu0 %v1643_v27  ;;  %v3083_v27 = vld [vmem:[#allocation8 + $0x20] sm:$0xff]  }
 0x1c5   :  { %2075 = vmatmul.mubr.bf16.vlgmr.msra.gmra.mrb[8].mxu0 %v1642_v29  ;;  %v3085_v29 = vld [vmem:[#allocation8 + $0x28] sm:$0xff]  }
 0x1c6   :  { %2084 = vmatpush1.bf16.msra.mxu0 %v3026_v28  ;;  %v3084_v28 = vld [vmem:[#allocation8 + $0x68] sm:$0xff]  }
 0x1c7   :  { %2085 = vmatprep.subr.bf16.mxu0 %v3031_v8  ;;  %v3086_v8 = vld [vmem:[#allocation8 + $0x70] sm:$0xff]  }
 0x1ca   :  { %2086 = vmatpush1.bf16.msra.mxu0 %v3029_v30  ;;  %v3087_v30 = vld [vmem:[#allocation8 + $0x30] sm:$0xff]  }
 0x1cb   :  { %2087 = vmatprep.subr.bf16.mxu0 %v3034_v31  ;;  %v3088_v31 = vld [vmem:[#allocation8 + $0x78] sm:$0xff]  }
 0x1ce   :  { %2088 = vmatpush1.bf16.msra.mxu0 %v3032_v32  ;;  %v3089_v32 = vld [vmem:[#allocation8 + $0x38] sm:$0xff]  }
 0x1cf   :  { %2089 = vmatprep.subr.bf16.mxu0 %v3037_v52  ;;  %v1710_v52 = vld [vmem:[%s3401_s4] sm:$0x3] }
 0x1d2   :  { %2090 = vmatpush1.bf16.msra.mxu0 %v3035_v33  ;;  %v1715_v33 = vrot.slane %v1710_v52, %v296_v62 }
 0x1d3   :  { %2091 = vmatprep.subr.bf16.mxu0 %v3040_v34  ;;  %v1719_v34 = vrot.slane %v1710_v52, %v300_v0 }
 0x1d6   :  { %2092 = vmatpush1.bf16.msra.mxu0 %v3038_v36 }
 0x1d7   :  { %2093 = vmatprep.subr.bf16.mxu0 %v3043_v37 }
 0x1da   :  { %2094 = vmatpush1.bf16.msra.mxu0 %v3041_v38 }
 0x1db   :  { %2095 = vmatprep.subr.bf16.mxu0 %v3046_v39 }
 0x1de   :  { %2096 = vmatpush1.bf16.msra.mxu0 %v3044_v40 }
 0x1df   :  { %2097 = vmatprep.subr.bf16.mxu0 %v3049_v41 }
 0x1e2   :  { %2098 = vmatpush1.bf16.msra.mxu0 %v3047_v42 }
 0x1e3   :  { %2099 = vmatprep.subr.bf16.mxu0 %v3052_v43 }
 0x1e6   :  { %2100 = vmatpush1.bf16.msra.mxu0 %v3050_v44 }
 0x1e7   :  { %2101 = vmatprep.subr.bf16.mxu0 %v3055_v45 }
 0x1ea   :  { %2102 = vmatpush1.bf16.msra.mxu0 %v3053_v46 }
 0x1eb   :  { %2103 = vmatprep.subr.bf16.mxu0 %v3058_v47 }
 0x1ee   :  { %2104 = vmatpush1.bf16.msra.mxu0 %v3056_v48 }
 0x1ef   :  { %2105 = vmatprep.subr.bf16.mxu0 %v3061_v49 }
 0x1f2   :  { %2106 = vmatpush1.bf16.msra.mxu0 %v3059_v50 }
 0x1f3   :  { %2107 = vmatprep.subr.bf16.mxu0 %v3064_v51 }
 0x1f6   :  { %2108 = vmatpush1.bf16.msra.mxu0 %v3062_v53  ;;  %v2603_v53 = vld [vmem:[%s3403_s6] ss:$0 sm:$0xff]  ;;  %s3194_s6 = scalar_lea.vmem %s2331_s9, 128 }
 0x1f7   :  { %2109 = vmatprep.subr.bf16.mxu0 %v3067_v54  ;;  %p3195_p4 = scmp.ne.s32.totalorder %s2331_s9, %s3194_s6  ;;  %p3200_p6 = scmp.lt.s32.totalorder %s3194_s6, %s3194_s6 }
 0x1f9   :  { %p3201_p7 = por %p3200_p6, %p3199_p5 }
 0x1fa   :  { %2110 = vmatpush1.bf16.msra.mxu0 %v3065_v55 }
 0x1fb   :  { %2111 = vmatprep.subr.bf16.mxu0 %v3070_v56  ;;  %p3202_p8 = pnand %p3201_p7, %p3195_p4 }
 0x1fe   :  { %2112 = vmatpush1.bf16.msra.mxu0 %v3068_v57 }
 0x1ff   :  { %2113 = vmatprep.subr.bf16.mxu0 %v3073_v58 }
 0x202   :  { %2114 = vmatpush1.bf16.msra.mxu0 %v3071_v59 }
 0x21f   :  { %v1578_v4 = vpop.f32.mrb[4].mxu1 }
 0x220   :  { %v2646_v5 = vadd.f32 %v1578_v4, %v305_v2  ;;  %v1580_v6 = vpop.f32.mrb[5].mxu1 }
 0x221   :  { %v2648_v7 = vadd.f32 %v1580_v6, %v309_v3  ;;  %v1582_v9 = vpop.f32.mrb[6].mxu1 }
 0x222   :  { %v2647_v10 = vadd.f32 %v2646_v5, %v3364_v17  ;;  %v1583_v12 = vpop.f32.mrb[7].mxu1  ;;  %v3080_v17 = vld [vmem:[#allocation8 + $0x58] sm:$0xff]  }
 0x223   :  { %v2649_v13 = vadd.f32 %v2648_v7, %v3366_v18  ;;  %v3081_v18 = vld [vmem:[#allocation8 + $0x18] sm:$0xff]   ;;  %2626 = vmatprep.subr.bf16.mxu1 %v3080_v17 }
 0x224   :  { %v1628_v14 = vmul.f32 0.5, %v2647_v10  ;;  %2627 = vmatpush3.bf16.msra.mxu1 %v3081_v18 }
 0x225   :  { %v1629_v15 = vmul.f32 0.5, %v2649_v13  ;;  %2628 = vmatprep.subr.bf16.mxu1 %v3082_v26 }
 0x226   :  { %v1632_v19 = vpack.c.bf16 %v1628_v14, %v1628_v14 }
 0x227   :  { %v1633_v20 = vpack.c.bf16 %v1629_v15, %v1629_v15 }
 0x228   :  { %3094 = vtanh.bf16 %v1632_v19  ;;  %2629 = vmatpush3.bf16.msra.mxu1 %v3083_v27 }
 0x229   :  { %3096 = vtanh.bf16 %v1633_v20  ;;  %2630 = vmatprep.subr.bf16.mxu1 %v3084_v28 }
 0x22c   :  { %2631 = vmatpush3.bf16.msra.mxu1 %v3085_v29 }
 0x22d   :  { %2632 = vmatprep.subr.bf16.mxu1 %v3086_v8 }
 0x230   :  { %2633 = vmatpush3.bf16.msra.mxu1 %v3087_v30 }
 0x231   :  { %2634 = vmatprep.subr.bf16.mxu1 %v3088_v31 }
 0x233   :  { %v3095_v21 = vpop.eup %3094 }
 0x234   :  { %v3097_v22 = vpop.eup %3096  ;;  %v1640_v23 = vmul.bf16 1056980736, %v3095_v21  ;;  %2635 = vmatpush3.bf16.msra.mxu1 %v3089_v32 }
 0x235   :  { %v1641_v63 = vmul.bf16 1056980736, %v3097_v22 }
 0x236   :  { %v1644_v24 = vadd.bf16 1056980736, %v1640_v23 }
 0x237   :  { %v1645_v11 = vadd.bf16 1056980736, %v1641_v63 }
 0x239   :  { %2115 = vmatprep.mubr.bf16.mxu0 %v1645_v11 }
 0x23a   :  { %2116 = vmatmul.mubr.bf16.vlgmr.msra.gmra.mrb[8].mxu0 %v1644_v24 }
 0x30d   :  { %v2117_v36 = vpop.f32.mrb[8].mxu0 }
 0x30e   :  { %v2650_v37 = vadd.f32 %v2117_v36, %v1715_v33  ;;  %v2119_v38 = vpop.f32.mrb[9].mxu0 }
 0x30f   :  { %v2651_v39 = vadd.f32 %v2119_v38, %v1719_v34  ;;  %v2121_v40 = vpop.f32.mrb[10].mxu0 }
 0x310   :  { %v2124_v41 = vmul.f32 0.5, %v2650_v37  ;;  %v2122_v42 = vpop.f32.mrb[11].mxu0 }
 0x311   :  { %v2125_v43 = vmul.f32 0.5, %v2651_v39 }
 0x312   :  { %v2126_v44 = vpack.c.bf16 %v2124_v41, %v2124_v41 }
 0x313   :  { %v2127_v45 = vpack.c.bf16 %v2125_v43, %v2125_v43 }
 0x314   :  { %3098 = vtanh.bf16 %v2126_v44 }
 0x315   :  { %3100 = vtanh.bf16 %v2127_v45 }
 0x31f   :  { %v3099_v46 = vpop.eup %3098 }
 0x320   :  { %v3101_v47 = vpop.eup %3100  ;;  %v2130_v48 = vmul.bf16 1056980736, %v3099_v46 }
 0x321   :  { %v2131_v49 = vmul.bf16 1056980736, %v3101_v47 }
 0x322   :  { %v2132_v50 = vadd.bf16 1056980736, %v2130_v48 }
 0x323   :  { %v2133_v62 = vadd.bf16 1056980736, %v2131_v49 }
 0x325   :  { %2301 = vmatprep.mubr.bf16.mxu1 %v2133_v62 }
 0x326   :  { %2302 = vmatmul.mubr.bf16.vlgmr.msra.gmra.mrb[8].mxu1 %v2132_v50 }
 0x3f9   :  { %v2636_v0 = vpop.f32.mrb[8].mxu1 }
 0x3fa   :  { %v2637_v51 = vpop.f32.mrb[9].mxu1 }
 0x3fb   :  { %v2638_v54 = vadd.f32 %v2637_v51, %v2636_v0  ;;  %v2639_v55 = vpop.f32.mrb[10].mxu1 }
 0x3fc   :  { %v2640_v56 = vpop.f32.mrb[11].mxu1 }
 0x3fd   :  { %v2304_v57 = vadd.f32 %v2638_v54, %v2603_v53 }
 0x3ff   :  { %v2312_v58 = vsel %vm2311_vm1, %v2304_v57, -1e+30 }
 0x400   :  { %2313 = vmax.xlane.f32.xlu0 %v2312_v58 }
 0x48d   :  { %v2314_v59 = vpop.xlane.xlu0 %2313 }
 0x48e   :  { %v2315_v16 = vsub.f32 %v2312_v58, %v2314_v59 }
 0x490   :  { %v2316_v1 = vmul.f32 1.442695, %v2315_v16 }
 0x492   :  { %3102 = vpow2.f32 %v2316_v1 }
 0x49c   :  { %v3103_v2 = vpop.eup %3102 }
 0x49d   :  { %2318 = vadd.xlane.f32.xlu0 %v3103_v2 }
 0x52a   :  { %v2319_v60 = vpop.xlane.xlu0 %2318 }
 0x52b   :  { %3104 = vlog2.f32 %v2319_v60 }
 0x535   :  { %v3105_v3 = vpop.eup %3104 }
 0x536   :  { %v2321_v4 = vmul.f32 0.6931472, %v3105_v3 }
 0x538   :  { %v2322_v5 = vsub.f32 %v2315_v16, %v2321_v4 }
 0x53a   :  { %2323 = vst [vmem:[#allocation10] sm:$0xff] %v2322_v5 }
 0x53b   :  { %3205 = shalt.err (!%p3202_p8)
}
 0x53c   :  { %s3206_s12 = scalar_lea.hbm %s3404_s7, 128 }
 0x53d   :  { %p3207_p9 = scmp.ne.s32.totalorder %s3404_s7, %s3206_s12  ;;  %p3210_p10 = scmp.lt.u32.totalorder %s3206_s12, %s3404_s7 }
 0x53f   :  { %p3212_p11 = pnand %p3210_p10, %p3207_p9 }
 0x541   :  { %3215 = shalt.err (!%p3212_p11)
}
 0x542   :  { %2333 = dma.vmem_to_hbm [thread:$0]  %s2331_s9, 128, %s3404_s7, [#allocation4]  }
 0x543   :  { %3222 = dma.done.wait [#allocation4], 128  }
 0x544   :  { %3223 = vsyncadd [#allocation4], 4294967168 }
 0x545   :  { %2337 = vsyncpa [#allocation3], 1 }
 0x546   :  { %2338 = vsyncpa [#allocation6], 1 }
 0x547   :  { %2339 = vsyncpa [#allocation9], 1 }
 0x548   :  { %2340 = vsyncpa [#allocation4], 1 }

</bundles_post_ra>
